<compile_context>
chip_gen: v7x
topology: tpu7x:2x2x1
jax: 0.10.0
libtpu: 0.0.40
codegen_flags: <defaults>
</compile_context>

<pallas_src>
import functools

import jax
import jax.numpy as jnp
from jax.experimental import pallas as pl
from jax.experimental.pallas import tpu as pltpu


def _round_up(x, m):
    return ((x + m - 1) // m) * m


def _pad_channels(c):
    # Lane-density policy: big channel counts go to multiples of 128 (dense
    # stores, full MXU lanes); small ones only to the sublane multiple of 8 so
    # the padding overhead stays bounded.
    if c % 128 == 0:
        return c
    if c >= 128:
        return _round_up(c, 128)
    return _round_up(c, 8)


def _tpu_generation():
    try:
        kind = jax.devices()[0].device_kind.lower()
    except Exception:
        return 0
    for g in (7, 6, 5, 4):
        if f"v{g}" in kind:
            return g
    return 0


def _dwsep_kernel(xt_ref, wdw_ref, wpw_ref, b1_ref, b2_ref, o_ref, *,
                  stride, row_tile):
    # xt_ref : (S2, nb, Hh, Wh, Cp) padded image(s); S2=1 (stride=1) or S2=4
    #          (stride=2, 2x2 space-to-depth parity split).  Its index_map is
    #          constant along the row-tile grid axis, so it is DMA'd once per
    #          batch block and stays resident in VMEM across row tiles.
    # wdw_ref: (9, 1, Cp)   depthwise 3x3 taps (f32), BN1 scale folded in
    # wpw_ref: (Cp, Coutp)  pointwise weights (bf16), BN2 scale folded in
    # b1_ref : (1, Cp)      BN1 shift (f32)
    # b2_ref : (1, Coutp)   BN2 shift (f32)
    # o_ref  : (nb, row_tile, Wop, Coutp) f32
    nb, _, Wop, Coutp = o_ref.shape
    Cp = wpw_ref.shape[0]

    r = pl.program_id(1)
    row0 = r * row_tile
    if row_tile % 8 == 0:
        row0 = pl.multiple_of(row0, 8)          # aligned slab loads

    w = wdw_ref[...]                            # hoisted (9, 1, Cp)

    # ---- depthwise 3x3: 3 / 6 row-slab loads; kw taps = static sub-slices --
    acc = None
    for kh in range(3):
        if stride == 1:
            slabs = (xt_ref[0, :, pl.ds(row0 + kh, row_tile), :, :]
                     .astype(jnp.float32),)                    # (nb,rt,Wh,Cp)
            taps = ((0, 0), (0, 1), (0, 2))                    # (slab, dw)
        else:  # stride == 2: parity images (kh%2, kw%2), halved offsets
            dh, ph = kh // 2, kh % 2
            slabs = tuple(
                xt_ref[2 * ph + pw, :, pl.ds(row0 + dh, row_tile), :, :]
                .astype(jnp.float32) for pw in (0, 1))
            taps = ((0, 0), (1, 0), (0, 1))                    # kw = 0, 1, 2
        for kw in range(3):
            si, dw = taps[kw]
            win = slabs[si][:, :, dw:dw + Wop, :]              # (nb,rt,Wop,Cp)
            prod = win * w[kh * 3 + kw]                        # f32 VPU MAC
            acc = prod if acc is None else acc + prod

    # ---- BN1 shift (scale already folded into the taps) + ReLU6 ----
    y = jnp.clip(acc + b1_ref[...], 0.0, 6.0)

    # ---- pointwise 1x1: bf16 MXU matmul, f32 accumulation ----
    # Wop % 8 == 0, so merging (nb, row_tile, Wop) is a free (no-repack)
    # reshape on both sides of the matmul.
    y2 = y.reshape(nb * row_tile * Wop, Cp).astype(wpw_ref.dtype)
    z = jnp.dot(y2, wpw_ref[...], preferred_element_type=jnp.float32)

    # ---- BN2 shift + ReLU6 ----
    out = jnp.clip(z + b2_ref[...], 0.0, 6.0)
    o_ref[...] = out.reshape(nb, row_tile, Wop, Coutp)


@functools.partial(jax.jit, static_argnames=("stride", "row_tile",
                                              "batch_tile"))
def depthwise_separable_conv(x_nchw, w_dw, w_pw, scale1, shift1, scale2,
                             shift2, *, stride, row_tile=None,
                             batch_tile=None):
    """x_nchw: (N, C, H, W) float32.  Returns (N, Cout, Ho, Wo) float32."""
    if stride not in (1, 2):
        raise NotImplementedError("MobileNet block uses stride 1 or 2")
    N, C, H, W = x_nchw.shape
    Cout = w_pw.shape[0]
    Ho = (H - 1) // stride + 1
    Wo = (W - 1) // stride + 1
    Cp = _pad_channels(C)
    Coutp = _pad_channels(Cout)
    Wop = _round_up(Wo, 8)                      # free reshapes around the dot

    gen = _tpu_generation()
    act_dtype = jnp.bfloat16 if gen >= 6 else jnp.float32  # no bf16 VPU on v5e
    vmem_limit = (64 << 20) if gen in (5, 6) else (32 << 20)

    # ---- tile sizing: fill the MXU M dim; fold batches for small images ----
    target_m = 128 if gen == 5 else 256
    if row_tile is None:
        row_tile = min(Ho, max(1, -(-target_m // Wop)))
    row_tile = max(1, min(row_tile, Ho))
    R = pl.cdiv(Ho, row_tile)
    Ho_pad = R * row_tile
    if batch_tile is None:
        want = max(1, -(-target_m // (row_tile * Wop)))
        batch_tile = 1
        for d in range(1, N + 1):
            if N % d == 0:
                batch_tile = d
                if d >= want:
                    break
    assert N % batch_tile == 0, "batch_tile must divide the batch"
    nb = batch_tile
    NB = N // nb

    # ---- glue: NCHW -> NHWC (act dtype), zero pad, parity split ----
    x = jnp.transpose(x_nchw, (0, 2, 3, 1)).astype(act_dtype)
    if stride == 1:
        S2, Hh, Wh = 1, Ho_pad + 2, Wop + 2
        xpad = jnp.pad(x, ((0, 0), (1, Hh - H - 1), (1, Wh - W - 1),
                           (0, Cp - C)))
        xt = xpad[None]                                  # (1, N, Hh, Wh, Cp)
    else:
        S2, Hh, Wh = 4, Ho_pad + 1, Wop + 1
        xpad = jnp.pad(x, ((0, 0), (1, 2 * Hh - H - 1),
                           (1, 2 * Wh - W - 1), (0, Cp - C)))
        # xt[2*ph+pw, n, t, u, c] == xpad[n, 2t+ph, 2u+pw, c]
        xt = jnp.transpose(xpad.reshape(N, Hh, 2, Wh, 2, Cp),
                           (2, 4, 0, 1, 3, 5)).reshape(4, N, Hh, Wh, Cp)

    # ---- glue: fold BN scales into the conv weights (one-time, tiny) ----
    s1 = scale1.astype(jnp.float32)
    s2 = scale2.astype(jnp.float32)
    wdw = (jnp.transpose(w_dw[:, 0, :, :], (1, 2, 0)).reshape(9, C)
           * s1[None, :]).astype(jnp.float32)
    wdw = jnp.pad(wdw, ((0, 0), (0, Cp - C))).reshape(9, 1, Cp)
    wpw = (jnp.transpose(w_pw[:, :, 0, 0], (1, 0)) * s2[None, :])
    wpw = jnp.pad(wpw, ((0, Cp - C), (0, Coutp - Cout))).astype(jnp.bfloat16)
    b1 = jnp.pad(shift1.astype(jnp.float32), (0, Cp - C)).reshape(1, Cp)
    b2 = jnp.pad(shift2.astype(jnp.float32), (0, Coutp - Cout)).reshape(1, Coutp)

    # ---- VMEM budget sanity (blocks are double-buffered; v7x has 64 MiB) ---
    act_b = jnp.dtype(act_dtype).itemsize
    est = (2 * (S2 * nb * Hh * Wh * Cp * act_b
                + nb * row_tile * Wop * Coutp * 4)
           + 9 * Cp * 4 + Cp * Coutp * 2 + 4 * (Cp + Coutp))
    if est > vmem_limit:
        # TODO(synk): for very large layers, switch the activation to halo'd
        # row-slab streaming (memory_space=pl.ANY + manual double-buffered
        # make_async_copy) instead of whole-image VMEM residency.
        raise NotImplementedError(
            f"block plan needs ~{est} B of VMEM (> {vmem_limit} B budget)")

    kernel = functools.partial(_dwsep_kernel, stride=stride, row_tile=row_tile)
    out = pl.pallas_call(
        kernel,
        out_shape=jax.ShapeDtypeStruct((N, Ho_pad, Wop, Coutp), jnp.float32),
        grid=(NB, R),
        in_specs=[
            # Whole (parity-split) batch block; block index constant along the
            # row axis -> fetched once per batch block, resident across tiles.
            pl.BlockSpec((S2, nb, Hh, Wh, Cp), lambda b, r: (0, b, 0, 0, 0)),
            pl.BlockSpec((9, 1, Cp), lambda b, r: (0, 0, 0)),
            pl.BlockSpec((Cp, Coutp), lambda b, r: (0, 0)),
            pl.BlockSpec((1, Cp), lambda b, r: (0, 0)),
            pl.BlockSpec((1, Coutp), lambda b, r: (0, 0)),
        ],
        out_specs=pl.BlockSpec((nb, row_tile, Wop, Coutp),
                               lambda b, r: (b, r, 0, 0)),
        compiler_params=pltpu.CompilerParams(
            dimension_semantics=("parallel", "parallel"),
            vmem_limit_bytes=vmem_limit),
    )(xt, wdw, wpw, b1, b2)

    # Padded rows / cols / channels are sliced off here (kept dense in-kernel).
    return jnp.transpose(out[:, :Ho, :Wo, :Cout], (0, 3, 1, 2))


def _reference(x, w_dw, w_pw, scale1, shift1, scale2, shift2, stride):
    """Pure-JAX reference (lax convs, f32) for correctness checking."""
    C = x.shape[1]
    y = jax.lax.conv_general_dilated(
        x, w_dw, window_strides=(stride, stride), padding=((1, 1), (1, 1)),
        dimension_numbers=("NCHW", "OIHW", "NCHW"), feature_group_count=C)
    y = jnp.clip(y * scale1[None, :, None, None]
                 + shift1[None, :, None, None], 0.0, 6.0)
    z = jax.lax.conv_general_dilated(
        y, w_pw, window_strides=(1, 1), padding=((0, 0), (0, 0)),
        dimension_numbers=("NCHW", "OIHW", "NCHW"))
    return jnp.clip(z * scale2[None, :, None, None]
                    + shift2[None, :, None, None], 0.0, 6.0)


if __name__ == "__main__":
    N, in_c, out_c, H, W = 2, 4, 8, 16, 16
    eps = 1e-5

    key = jax.random.PRNGKey(0)
    k1, k2, k3 = jax.random.split(key, 3)

    x = jax.random.normal(k1, (N, in_c, H, W), dtype=jnp.float32)

    # Conv weights (PyTorch shapes): depthwise (C,1,3,3), pointwise (Cout,C,1,1)
    w_dw = 0.2 * jax.random.normal(k2, (in_c, 1, 3, 3), dtype=jnp.float32)
    w_pw = 0.2 * jax.random.normal(k3, (out_c, in_c, 1, 1), dtype=jnp.float32)

    # BatchNorm params (eval-mode), deterministic & non-trivial.
    gamma1 = 1.0 + 0.1 * jnp.arange(in_c, dtype=jnp.float32)
    beta1 = 0.05 * jnp.arange(in_c, dtype=jnp.float32)
    mean1 = 0.02 * jnp.arange(in_c, dtype=jnp.float32)
    var1 = 1.0 + 0.03 * jnp.arange(in_c, dtype=jnp.float32)
    gamma2 = 1.0 + 0.05 * jnp.arange(out_c, dtype=jnp.float32)
    beta2 = 0.02 * jnp.arange(out_c, dtype=jnp.float32)
    mean2 = 0.01 * jnp.arange(out_c, dtype=jnp.float32)
    var2 = 1.0 + 0.04 * jnp.arange(out_c, dtype=jnp.float32)

    scale1 = gamma1 / jnp.sqrt(var1 + eps)
    shift1 = beta1 - mean1 * scale1
    scale2 = gamma2 / jnp.sqrt(var2 + eps)
    shift2 = beta2 - mean2 * scale2

    # bf16 MXU (and bf16 activations on v6e/v7x) => looser tolerance than f32.
    ATOL = RTOL = 7e-2

    configs = (
        dict(stride=1),                          # auto tiles (whole image)
        dict(stride=2),                          # auto tiles (batch folded)
        dict(stride=1, row_tile=6),              # Ho % row_tile != 0
        dict(stride=2, row_tile=3, batch_tile=1),  # multi-tile stride-2 path
    )
    for cfg in configs:
        out = depthwise_separable_conv(x, w_dw, w_pw, scale1, shift1, scale2,
                                       shift2, **cfg)
        out = jax.block_until_ready(out)
        ref = _reference(x, w_dw, w_pw, scale1, shift1, scale2, shift2,
                         cfg["stride"])
        ho = (H - 1) // cfg["stride"] + 1
        assert out.shape == ref.shape == (N, out_c, ho, ho), (cfg, out.shape)
        err = float(jnp.max(jnp.abs(out - ref)))
        assert bool(jnp.allclose(out, ref, atol=ATOL, rtol=RTOL)), (cfg, err)

    print("KERNEL_OK")
</pallas_src>

<mosaic_0001>
module attributes {stable_mosaic.version = 11 : i64} {
  func.func @_dwsep_kernel(%arg0: i32, %arg1: i32, %arg2: memref<1x1x18x18x8xf32, #tpu.memory_space<vmem>>, %arg3: memref<9x1x8xf32, #tpu.memory_space<vmem>>, %arg4: memref<8x8xbf16, #tpu.memory_space<vmem>>, %arg5: memref<1x8xf32, #tpu.memory_space<vmem>>, %arg6: memref<1x8xf32, #tpu.memory_space<vmem>>, %arg7: memref<1x16x16x8xf32, #tpu.memory_space<vmem>>) attributes {dimension_semantics = [#tpu.dimension_semantics<parallel>, #tpu.dimension_semantics<parallel>], iteration_bounds = array<i64: 2, 1>, scalar_prefetch = 0 : i64, scratch_operands = 0 : i64, tpu.core_type = #tpu.core_type<tc>, window_params = [{transform_indices = @transform_0, window_bounds = array<i64: 1, 1, 18, 18, 8>}, {pipeline_mode = #tpu.pipeline_mode<synchronous>, transform_indices = @transform_1, window_bounds = array<i64: 9, 1, 8>}, {pipeline_mode = #tpu.pipeline_mode<synchronous>, transform_indices = @transform_2, window_bounds = array<i64: 8, 8>}, {pipeline_mode = #tpu.pipeline_mode<synchronous>, transform_indices = @transform_3, window_bounds = array<i64: 1, 8>}, {pipeline_mode = #tpu.pipeline_mode<synchronous>, transform_indices = @transform_4, window_bounds = array<i64: 1, 8>}, {transform_indices = @transform_5, window_bounds = array<i64: 1, 16, 16, 8>}]} {
    %c16_i32 = arith.constant 16 : i32
    %0 = arith.muli %arg1, %c16_i32 : i32
    %1 = tpu.assume_multiple %0, 8 : i32
    %c0 = arith.constant 0 : index
    %c0_0 = arith.constant 0 : index
    %c0_1 = arith.constant 0 : index
    %2 = vector.load %arg3[%c0, %c0_0, %c0_1] : memref<9x1x8xf32, #tpu.memory_space<vmem>>, vector<9x1x8xf32>
    %c0_i32 = arith.constant 0 : i32
    %3 = arith.addi %1, %c0_i32 : i32
    %c0_2 = arith.constant 0 : index
    %c0_3 = arith.constant 0 : index
    %4 = arith.index_cast %3 : i32 to index
    %c0_4 = arith.constant 0 : index
    %c0_5 = arith.constant 0 : index
    %5 = vector.load %arg2[%c0_2, %c0_3, %4, %c0_4, %c0_5] : memref<1x1x18x18x8xf32, #tpu.memory_space<vmem>>, vector<1x1x16x18x8xf32>
    %6 = vector.shape_cast %5 : vector<1x1x16x18x8xf32> to vector<1x16x18x8xf32>
    %7 = vector.extract_strided_slice %6 {offsets = [0, 0, 0, 0], sizes = [1, 16, 16, 8], strides = [1, 1, 1, 1]} : vector<1x16x18x8xf32> to vector<1x16x16x8xf32>
    %8 = vector.extract_strided_slice %2 {offsets = [0, 0, 0], sizes = [1, 1, 8], strides = [1, 1, 1]} : vector<9x1x8xf32> to vector<1x1x8xf32>
    %9 = vector.shape_cast %8 : vector<1x1x8xf32> to vector<1x8xf32>
    %10 = vector.shape_cast %9 : vector<1x8xf32> to vector<1x1x1x8xf32>
    %11 = vector.broadcast %10 : vector<1x1x1x8xf32> to vector<1x16x16x8xf32>
    %12 = arith.mulf %7, %11 : vector<1x16x16x8xf32>
    %13 = vector.extract_strided_slice %6 {offsets = [0, 0, 1, 0], sizes = [1, 16, 16, 8], strides = [1, 1, 1, 1]} : vector<1x16x18x8xf32> to vector<1x16x16x8xf32>
    %14 = vector.extract_strided_slice %2 {offsets = [1, 0, 0], sizes = [1, 1, 8], strides = [1, 1, 1]} : vector<9x1x8xf32> to vector<1x1x8xf32>
    %15 = vector.shape_cast %14 : vector<1x1x8xf32> to vector<1x8xf32>
    %16 = vector.shape_cast %15 : vector<1x8xf32> to vector<1x1x1x8xf32>
    %17 = vector.broadcast %16 : vector<1x1x1x8xf32> to vector<1x16x16x8xf32>
    %18 = arith.mulf %13, %17 : vector<1x16x16x8xf32>
    %19 = arith.addf %12, %18 : vector<1x16x16x8xf32>
    %20 = vector.extract_strided_slice %6 {offsets = [0, 0, 2, 0], sizes = [1, 16, 16, 8], strides = [1, 1, 1, 1]} : vector<1x16x18x8xf32> to vector<1x16x16x8xf32>
    %21 = vector.extract_strided_slice %2 {offsets = [2, 0, 0], sizes = [1, 1, 8], strides = [1, 1, 1]} : vector<9x1x8xf32> to vector<1x1x8xf32>
    %22 = vector.shape_cast %21 : vector<1x1x8xf32> to vector<1x8xf32>
    %23 = vector.shape_cast %22 : vector<1x8xf32> to vector<1x1x1x8xf32>
    %24 = vector.broadcast %23 : vector<1x1x1x8xf32> to vector<1x16x16x8xf32>
    %25 = arith.mulf %20, %24 : vector<1x16x16x8xf32>
    %26 = arith.addf %19, %25 : vector<1x16x16x8xf32>
    %c1_i32 = arith.constant 1 : i32
    %27 = arith.addi %1, %c1_i32 : i32
    %c0_6 = arith.constant 0 : index
    %c0_7 = arith.constant 0 : index
    %28 = arith.index_cast %27 : i32 to index
    %c0_8 = arith.constant 0 : index
    %c0_9 = arith.constant 0 : index
    %29 = vector.load %arg2[%c0_6, %c0_7, %28, %c0_8, %c0_9] : memref<1x1x18x18x8xf32, #tpu.memory_space<vmem>>, vector<1x1x16x18x8xf32>
    %30 = vector.shape_cast %29 : vector<1x1x16x18x8xf32> to vector<1x16x18x8xf32>
    %31 = vector.extract_strided_slice %30 {offsets = [0, 0, 0, 0], sizes = [1, 16, 16, 8], strides = [1, 1, 1, 1]} : vector<1x16x18x8xf32> to vector<1x16x16x8xf32>
    %32 = vector.extract_strided_slice %2 {offsets = [3, 0, 0], sizes = [1, 1, 8], strides = [1, 1, 1]} : vector<9x1x8xf32> to vector<1x1x8xf32>
    %33 = vector.shape_cast %32 : vector<1x1x8xf32> to vector<1x8xf32>
    %34 = vector.shape_cast %33 : vector<1x8xf32> to vector<1x1x1x8xf32>
    %35 = vector.broadcast %34 : vector<1x1x1x8xf32> to vector<1x16x16x8xf32>
    %36 = arith.mulf %31, %35 : vector<1x16x16x8xf32>
    %37 = arith.addf %26, %36 : vector<1x16x16x8xf32>
    %38 = vector.extract_strided_slice %30 {offsets = [0, 0, 1, 0], sizes = [1, 16, 16, 8], strides = [1, 1, 1, 1]} : vector<1x16x18x8xf32> to vector<1x16x16x8xf32>
    %39 = vector.extract_strided_slice %2 {offsets = [4, 0, 0], sizes = [1, 1, 8], strides = [1, 1, 1]} : vector<9x1x8xf32> to vector<1x1x8xf32>
    %40 = vector.shape_cast %39 : vector<1x1x8xf32> to vector<1x8xf32>
    %41 = vector.shape_cast %40 : vector<1x8xf32> to vector<1x1x1x8xf32>
    %42 = vector.broadcast %41 : vector<1x1x1x8xf32> to vector<1x16x16x8xf32>
    %43 = arith.mulf %38, %42 : vector<1x16x16x8xf32>
    %44 = arith.addf %37, %43 : vector<1x16x16x8xf32>
    %45 = vector.extract_strided_slice %30 {offsets = [0, 0, 2, 0], sizes = [1, 16, 16, 8], strides = [1, 1, 1, 1]} : vector<1x16x18x8xf32> to vector<1x16x16x8xf32>
    %46 = vector.extract_strided_slice %2 {offsets = [5, 0, 0], sizes = [1, 1, 8], strides = [1, 1, 1]} : vector<9x1x8xf32> to vector<1x1x8xf32>
    %47 = vector.shape_cast %46 : vector<1x1x8xf32> to vector<1x8xf32>
    %48 = vector.shape_cast %47 : vector<1x8xf32> to vector<1x1x1x8xf32>
    %49 = vector.broadcast %48 : vector<1x1x1x8xf32> to vector<1x16x16x8xf32>
    %50 = arith.mulf %45, %49 : vector<1x16x16x8xf32>
    %51 = arith.addf %44, %50 : vector<1x16x16x8xf32>
    %c2_i32 = arith.constant 2 : i32
    %52 = arith.addi %1, %c2_i32 : i32
    %c0_10 = arith.constant 0 : index
    %c0_11 = arith.constant 0 : index
    %53 = arith.index_cast %52 : i32 to index
    %c0_12 = arith.constant 0 : index
    %c0_13 = arith.constant 0 : index
    %54 = vector.load %arg2[%c0_10, %c0_11, %53, %c0_12, %c0_13] : memref<1x1x18x18x8xf32, #tpu.memory_space<vmem>>, vector<1x1x16x18x8xf32>
    %55 = vector.shape_cast %54 : vector<1x1x16x18x8xf32> to vector<1x16x18x8xf32>
    %56 = vector.extract_strided_slice %55 {offsets = [0, 0, 0, 0], sizes = [1, 16, 16, 8], strides = [1, 1, 1, 1]} : vector<1x16x18x8xf32> to vector<1x16x16x8xf32>
    %57 = vector.extract_strided_slice %2 {offsets = [6, 0, 0], sizes = [1, 1, 8], strides = [1, 1, 1]} : vector<9x1x8xf32> to vector<1x1x8xf32>
    %58 = vector.shape_cast %57 : vector<1x1x8xf32> to vector<1x8xf32>
    %59 = vector.shape_cast %58 : vector<1x8xf32> to vector<1x1x1x8xf32>
    %60 = vector.broadcast %59 : vector<1x1x1x8xf32> to vector<1x16x16x8xf32>
    %61 = arith.mulf %56, %60 : vector<1x16x16x8xf32>
    %62 = arith.addf %51, %61 : vector<1x16x16x8xf32>
    %63 = vector.extract_strided_slice %55 {offsets = [0, 0, 1, 0], sizes = [1, 16, 16, 8], strides = [1, 1, 1, 1]} : vector<1x16x18x8xf32> to vector<1x16x16x8xf32>
    %64 = vector.extract_strided_slice %2 {offsets = [7, 0, 0], sizes = [1, 1, 8], strides = [1, 1, 1]} : vector<9x1x8xf32> to vector<1x1x8xf32>
    %65 = vector.shape_cast %64 : vector<1x1x8xf32> to vector<1x8xf32>
    %66 = vector.shape_cast %65 : vector<1x8xf32> to vector<1x1x1x8xf32>
    %67 = vector.broadcast %66 : vector<1x1x1x8xf32> to vector<1x16x16x8xf32>
    %68 = arith.mulf %63, %67 : vector<1x16x16x8xf32>
    %69 = arith.addf %62, %68 : vector<1x16x16x8xf32>
    %70 = vector.extract_strided_slice %55 {offsets = [0, 0, 2, 0], sizes = [1, 16, 16, 8], strides = [1, 1, 1, 1]} : vector<1x16x18x8xf32> to vector<1x16x16x8xf32>
    %71 = vector.extract_strided_slice %2 {offsets = [8, 0, 0], sizes = [1, 1, 8], strides = [1, 1, 1]} : vector<9x1x8xf32> to vector<1x1x8xf32>
    %72 = vector.shape_cast %71 : vector<1x1x8xf32> to vector<1x8xf32>
    %73 = vector.shape_cast %72 : vector<1x8xf32> to vector<1x1x1x8xf32>
    %74 = vector.broadcast %73 : vector<1x1x1x8xf32> to vector<1x16x16x8xf32>
    %75 = arith.mulf %70, %74 : vector<1x16x16x8xf32>
    %76 = arith.addf %69, %75 : vector<1x16x16x8xf32>
    %c0_14 = arith.constant 0 : index
    %c0_15 = arith.constant 0 : index
    %77 = vector.load %arg5[%c0_14, %c0_15] : memref<1x8xf32, #tpu.memory_space<vmem>>, vector<1x8xf32>
    %78 = vector.shape_cast %77 : vector<1x8xf32> to vector<1x1x1x8xf32>
    %79 = vector.broadcast %78 : vector<1x1x1x8xf32> to vector<1x16x16x8xf32>
    %80 = arith.addf %76, %79 : vector<1x16x16x8xf32>
    %cst = arith.constant 0.000000e+00 : f32
    %cst_16 = arith.constant 6.000000e+00 : f32
    %81 = vector.broadcast %cst : f32 to vector<1x16x16x8xf32>
    %82 = arith.maximumf %81, %80 : vector<1x16x16x8xf32>
    %83 = vector.broadcast %cst_16 : f32 to vector<1x16x16x8xf32>
    %84 = arith.minimumf %83, %82 : vector<1x16x16x8xf32>
    %85 = vector.shape_cast %84 : vector<1x16x16x8xf32> to vector<256x8xf32>
    %86 = arith.truncf %85 : vector<256x8xf32> to vector<256x8xbf16>
    %c0_17 = arith.constant 0 : index
    %c0_18 = arith.constant 0 : index
    %87 = vector.load %arg4[%c0_17, %c0_18] : memref<8x8xbf16, #tpu.memory_space<vmem>>, vector<8x8xbf16>
    %cst_19 = arith.constant dense<0.000000e+00> : vector<256x8xf32>
    %88 = tpu.matmul %86, %87, %cst_19 {dimension_numbers = #tpu.dot_dimension_numbers<[1], [0], [0], [1], [0, 0, 1, 1], [], []>} : vector<256x8xbf16>, vector<8x8xbf16>, vector<256x8xf32> -> vector<256x8xf32>
    %c0_20 = arith.constant 0 : index
    %c0_21 = arith.constant 0 : index
    %89 = vector.load %arg6[%c0_20, %c0_21] : memref<1x8xf32, #tpu.memory_space<vmem>>, vector<1x8xf32>
    %90 = vector.broadcast %89 : vector<1x8xf32> to vector<256x8xf32>
    %91 = arith.addf %88, %90 : vector<256x8xf32>
    %cst_22 = arith.constant 0.000000e+00 : f32
    %cst_23 = arith.constant 6.000000e+00 : f32
    %92 = vector.broadcast %cst_22 : f32 to vector<256x8xf32>
    %93 = arith.maximumf %92, %91 : vector<256x8xf32>
    %94 = vector.broadcast %cst_23 : f32 to vector<256x8xf32>
    %95 = arith.minimumf %94, %93 : vector<256x8xf32>
    %96 = vector.shape_cast %95 : vector<256x8xf32> to vector<1x16x16x8xf32>
    %c0_24 = arith.constant 0 : index
    %c0_25 = arith.constant 0 : index
    %c0_26 = arith.constant 0 : index
    %c0_27 = arith.constant 0 : index
    %97 = vector.load %arg7[%c0_24, %c0_25, %c0_26, %c0_27] : memref<1x16x16x8xf32, #tpu.memory_space<vmem>>, vector<1x16x16x8xf32>
    tpu.vector_store %arg7[%c0_24, %c0_25, %c0_26, %c0_27], %96 {strides = array<i32>} : memref<1x16x16x8xf32, #tpu.memory_space<vmem>>, vector<1x16x16x8xf32>,
    return
  }
  func.func @transform_0(%arg0: i32, %arg1: i32) -> (i32, i32, i32, i32, i32) {
    %c0_i32 = arith.constant 0 : i32
    %c0_i32_0 = arith.constant 0 : i32
    %c0_i32_1 = arith.constant 0 : i32
    %c0_i32_2 = arith.constant 0 : i32
    %c0_i32_3 = arith.constant 0 : i32
    return %c0_i32, %arg0, %c0_i32_0, %c0_i32_1, %c0_i32_2 : i32, i32, i32, i32, i32
  }
  func.func @transform_1(%arg0: i32, %arg1: i32) -> (i32, i32, i32) {
    %c0_i32 = arith.constant 0 : i32
    %c0_i32_0 = arith.constant 0 : i32
    %c0_i32_1 = arith.constant 0 : i32
    %c0_i32_2 = arith.constant 0 : i32
    return %c0_i32, %c0_i32_0, %c0_i32_1 : i32, i32, i32
  }
  func.func @transform_2(%arg0: i32, %arg1: i32) -> (i32, i32) {
    %c0_i32 = arith.constant 0 : i32
    %c0_i32_0 = arith.constant 0 : i32
    %c0_i32_1 = arith.constant 0 : i32
    return %c0_i32, %c0_i32_0 : i32, i32
  }
  func.func @transform_3(%arg0: i32, %arg1: i32) -> (i32, i32) {
    %c0_i32 = arith.constant 0 : i32
    %c0_i32_0 = arith.constant 0 : i32
    %c0_i32_1 = arith.constant 0 : i32
    return %c0_i32, %c0_i32_0 : i32, i32
  }
  func.func @transform_4(%arg0: i32, %arg1: i32) -> (i32, i32) {
    %c0_i32 = arith.constant 0 : i32
    %c0_i32_0 = arith.constant 0 : i32
    %c0_i32_1 = arith.constant 0 : i32
    return %c0_i32, %c0_i32_0 : i32, i32
  }
  func.func @transform_5(%arg0: i32, %arg1: i32) -> (i32, i32, i32, i32) {
    %c0_i32 = arith.constant 0 : i32
    %c0_i32_0 = arith.constant 0 : i32
    %c0_i32_1 = arith.constant 0 : i32
    return %arg0, %arg1, %c0_i32, %c0_i32_0 : i32, i32, i32, i32
  }
}

</mosaic_0001>

<bundles_post_ra>
// kernel: depthwise_separable_conv.1
= control target key start
LH: loop header
LB: loop body
LE: loop exit
PB: predicated region body
PF: predicated region fallthrough
CT: control target
= control target key end

     0   :  { %s2891_s18 = smov 0   ;;  %s2893_s19 = smov 0   ;;  %s4238_s0 = inlined_call_operand.vmem [shape: f32[1,2,18,18,8], index: 0, kind: input, shape index: {}]   ;;  %s4239_s1 = inlined_call_operand.vmem [shape: f32[9,1,8], index: 1, kind: input, shape index: {}]   ;;  %s4240_s2 = inlined_call_operand.vmem [shape: bf16[8,8], index: 2, kind: input, shape index: {}]   ;;  %s4241_s3 = inlined_call_operand.vmem [shape: f32[1,8], index: 3, kind: input, shape index: {}]   ;;  %s4242_s4 = inlined_call_operand.vmem [shape: f32[1,8], index: 4, kind: input, shape index: {}]   ;;  %s4243_s5 = inlined_call_operand.vmem [shape: f32[2,16,16,8], index: 5, kind: output, shape index: {}]  }
   0x1   :  { %s2895_s20 = smov 0  }
   0x2 LB: > { %s27_s21 = sadd.s32 1, %s2855_s19  ;;  %p2607_p0 = scmp.ge.s32.totalorder %s2859_s20, 1  ;;  %s2859_s20 = sphi %s2895_s20, %s15_s20   ;;  %s2855_s19 = sphi %s2893_s19, %s4245_s19   ;;  %s2851_s18 = sphi %s2891_s18, %s4244_s18  }
   0x3   : > { %p29_p1 = scmp.ge.s32.totalorder %s27_s21, 2  ;;  %p201_p2 = scmp.lt.s32.totalorder %s2859_s20, 3 }
   0x5   : > { %s4247_s21 = smov (%p29_p1, %s27_s21), 0  ;;  %p202_p3 = pnand %p2607_p0, %p201_p2 }
   0x6   : > { %v2188_v0 = vld [vmem:[%s4240_s2] sm:$0xf] (!%p202_p3)  ;;  %vm2245_vm0 = vcmask (!%p202_p3), 1043456   ;;  %p234_p4 = scmp.lt.s32.totalorder (!%p202_p3), %s2851_s18, 1  ;;  %vm451_vm1 = vcmask (!%p202_p3), 1046528   ;;  %vm698_vm2 = vcmask (!%p202_p3), 1045504  }
   0x7   : > { %205 = sbr.rel (%p202_p3) target bundleno = 559 (0x22f), region = 40  ;;  %2790 = vmatprep.subr.msk.bf16.mxu0 (!%p202_p3), %vm2245_vm0, %v2188_v0  ;;  %2791 = vmatprep.subr.msk.bf16.mxu1 (!%p202_p3), %vm2245_vm0, %v2188_v0  ;;  %v2247_v1 = vsel (!%p202_p3), %vm2245_vm0, %v2188_v0, 0  ;;  %v2918_v2 = vld [vmem:[%s4239_s1] ss:$0 sm:$0xff] (!%p202_p3)  ;;  %v2923_v3 = vld [vmem:[%s4239_s1 + $0x1] ss:$0 sm:$0xff] (!%p202_p3) }
   0x8   : > { %2755 = vmatpush3.bf16.msra.mxu0 (!%p202_p3), %v2247_v1  ;;  %2789 = vmatpush3.bf16.msra.mxu1 (!%p202_p3), %v2247_v1  ;;  %v2933_v4 = vld [vmem:[%s4239_s1 + $0x2] ss:$0 sm:$0xff] (!%p202_p3)  ;;  %v2938_v5 = vld [vmem:[%s4239_s1 + $0x3] ss:$0 sm:$0xff] (!%p202_p3)  ;;  %v2946_v9 = vld [vmem:[%s4239_s1 + $0x4] ss:$0 sm:$0xff] (!%p202_p3) }
   0x9   : > { %v2970_v29 = vld [vmem:[%s4239_s1 + $0x5] ss:$0 sm:$0xff] (!%p202_p3)  ;;  %v2981_v34 = vld [vmem:[%s4239_s1 + $0x6] ss:$0 sm:$0xff] (!%p202_p3)  ;;  %v2989_v43 = vld [vmem:[%s4239_s1 + $0x7] ss:$0 sm:$0xff] (!%p202_p3) }
   0xa   : > { %v3007_v54 = vld [vmem:[%s4239_s1 + $0x8] ss:$0 sm:$0xff] (!%p202_p3)  ;;  %vm2196_vm3 = vcmask (!%p202_p3), 64512  }
   0xe   : > { %s4249_s18 = smov (!%p234_p4, %s2851_s18), 1 }
   0xf   : > { %s2792_s24 = smul.u32 432, %s4249_s18  ;;  %s2736_s28 = sshll.u32 %s4249_s18, 8 }
  0x10   : > { %s4127_s30 = scalar_lea.vmem %s4243_s5, %s2736_s28 }
  0x11   : > { %s2928_s6 = scalar_lea.vmem %s4238_s0, %s2792_s24 }
  0x12   : > { %v263_v6 = vld [vmem:[%s2928_s6] sm:$0xff]  ;;  %v264_v7 = vld [vmem:[%s2928_s6 + $0x8] sm:$0xff]  ;;  %v265_v8 = vld [vmem:[%s2928_s6 + $0x10] sm:$0x3] }
  0x13   : > { %v317_v10 = vmul.f32 %v2918_v2, %v263_v6  ;;  %v318_v11 = vmul.f32 %v2918_v2, %v264_v7  ;;  %v355_v12 = vmul.f32 %v2923_v3, %v263_v6  ;;  %v356_v13 = vmul.f32 %v2923_v3, %v264_v7  ;;  %v2957_v18 = vld [vmem:[%s2928_s6 + $0x18] sm:$0xff]  ;;  %v2960_v19 = vld [vmem:[%s2928_s6 + $0x20] sm:$0xff]  ;;  %v2616_v20 = vld [vmem:[%s2928_s6 + $0x28] sm:$0x3] }
  0x14   : > { %v357_v14 = vmul.f32 %v2923_v3, %v265_v8  ;;  %v602_v15 = vmul.f32 %v2933_v4, %v263_v6  ;;  %v603_v16 = vmul.f32 %v2933_v4, %v264_v7  ;;  %v604_v17 = vmul.f32 %v2933_v4, %v265_v8  ;;  %v2997_v48 = vld [vmem:[%s2928_s6 + $0x30] sm:$0xff]  ;;  %v2667_v52 = vld [vmem:[%s2928_s6 + $0x40] sm:$0x3]  ;;  %v3010_v59 = vld [vmem:[%s2928_s6 + $0x38] sm:$0xff] }
  0x15   : > { %v452_v21 = vrot.slane %v355_v12, 1  ;;  %v453_v22 = vrot.slane %v356_v13, 1  ;;  %v900_v23 = vmul.f32 %v2938_v5, %v2957_v18  ;;  %v901_v24 = vmul.f32 %v2938_v5, %v2960_v19 }
  0x16   : > { %v455_v25 = vrot.slane %v357_v14, 1  ;;  %v699_v26 = vrot.slane %v602_v15, 2  ;;  %v700_v27 = vrot.slane %v603_v16, 2  ;;  %v702_v28 = vrot.slane %v604_v17, 2  ;;  %v287_v17 = vld [vmem:[%s2928_s6 + $0xc0] sm:$0xff] }
  0x17   : > { %v454_v30 = vsel %vm451_vm1, %v452_v21, %v453_v22  ;;  %v970_v31 = vmul.f32 %v2946_v9, %v2957_v18  ;;  %v971_v32 = vmul.f32 %v2946_v9, %v2960_v19  ;;  %v972_v33 = vmul.f32 %v2946_v9, %v2616_v20 }
  0x18   : > { %v456_v35 = vsel %vm451_vm1, %v453_v22, %v455_v25  ;;  %v564_v36 = vadd.f32 %v454_v30, %v317_v10  ;;  %v701_v37 = vsel %vm698_vm2, %v699_v26, %v700_v27  ;;  %v703_v38 = vsel %vm698_vm2, %v700_v27, %v702_v28 }
  0x19   : > { %v565_v39 = vadd.f32 %v456_v35, %v318_v11  ;;  %v1066_v40 = vrot.slane %v970_v31, 1  ;;  %v1067_v41 = vrot.slane %v971_v32, 1  ;;  %v1069_v42 = vrot.slane %v972_v33, 1 }
  0x1a   : > { %v811_v44 = vadd.f32 %v701_v37, %v564_v36  ;;  %v1216_v45 = vmul.f32 %v2970_v29, %v2957_v18  ;;  %v1217_v46 = vmul.f32 %v2970_v29, %v2960_v19  ;;  %v1218_v47 = vmul.f32 %v2970_v29, %v2616_v20  ;;  %v288_v20 = vld [vmem:[%s2928_s6 + $0xc8] sm:$0xff] }
  0x1b   : > { %v812_v49 = vadd.f32 %v703_v38, %v565_v39  ;;  %v1068_v50 = vsel %vm451_vm1, %v1066_v40, %v1067_v41  ;;  %v1070_v51 = vsel %vm451_vm1, %v1067_v41, %v1069_v42  ;;  %v1513_v53 = vmul.f32 %v2981_v34, %v2997_v48  ;;  %v3041_v41 = vld [vmem:[%s4241_s3] ss:$0 sm:$0xff] }
  0x1c   : > { %v932_v55 = vadd.f32 %v900_v23, %v811_v44  ;;  %v1312_v56 = vrot.slane %v1216_v45, 2  ;;  %v1313_v57 = vrot.slane %v1217_v46, 2  ;;  %v1315_v58 = vrot.slane %v1218_v47, 2 }
  0x1d   : > { %v933_v60 = vadd.f32 %v901_v24, %v812_v49  ;;  %v1514_v61 = vmul.f32 %v2981_v34, %v3010_v59  ;;  %v1583_v62 = vmul.f32 %v2989_v43, %v2997_v48  ;;  %v1584_v63 = vmul.f32 %v2989_v43, %v3010_v59  ;;  %v289_v24 = vld [vmem:[%s2928_s6 + $0xd0] sm:$0x3] }
  0x1e   : > { %v1178_v0 = vadd.f32 %v1068_v50, %v932_v55  ;;  %v1314_v1 = vsel %vm698_vm2, %v1312_v56, %v1313_v57  ;;  %v1316_v6 = vsel %vm698_vm2, %v1313_v57, %v1315_v58  ;;  %v1585_v7 = vmul.f32 %v2989_v43, %v2667_v52 }
  0x1f   : > { %v1179_v8 = vadd.f32 %v1070_v51, %v933_v60  ;;  %v1679_v10 = vrot.slane %v1583_v62, 1  ;;  %v1680_v11 = vrot.slane %v1584_v63, 1  ;;  %v1829_v12 = vmul.f32 %v3007_v54, %v2997_v48  ;;  %v3047_v51 = vld [vmem:[%s2928_s6 + $0xd8] sm:$0xff]  ;;  %v3055_v62 = vld [vmem:[%s2928_s6 + $0xe0] sm:$0xff]  ;;  %v2640_v63 = vld [vmem:[%s2928_s6 + $0xe8] sm:$0x3] }
  0x20   : > { %v1424_v13 = vadd.f32 %v1314_v1, %v1178_v0  ;;  %v1682_v14 = vrot.slane %v1585_v7, 1  ;;  %v1830_v15 = vmul.f32 %v3007_v54, %v3010_v59  ;;  %v1831_v16 = vmul.f32 %v3007_v54, %v2667_v52 }
  0x21   : > { %v1425_v21 = vadd.f32 %v1316_v6, %v1179_v8  ;;  %v1681_v22 = vsel %vm451_vm1, %v1679_v10, %v1680_v11  ;;  %v1925_v23 = vrot.slane %v1829_v12, 2  ;;  %v333_v25 = vmul.f32 %v2918_v2, %v287_v17 }
  0x22   : > { %v1545_v26 = vadd.f32 %v1513_v53, %v1424_v13  ;;  %v1683_v27 = vsel %vm451_vm1, %v1680_v11, %v1682_v14  ;;  %v1926_v28 = vrot.slane %v1830_v15, 2  ;;  %v1928_v30 = vrot.slane %v1831_v16, 2 }
  0x23   : > { %v1546_v31 = vadd.f32 %v1514_v61, %v1425_v21  ;;  %v334_v32 = vmul.f32 %v2918_v2, %v288_v20  ;;  %v379_v33 = vmul.f32 %v2923_v3, %v287_v17  ;;  %v380_v35 = vmul.f32 %v2923_v3, %v288_v20 }
  0x24   : > { %v1791_v36 = vadd.f32 %v1681_v22, %v1545_v26  ;;  %v1927_v37 = vsel %vm698_vm2, %v1925_v23, %v1926_v28  ;;  %v1929_v38 = vsel %vm698_vm2, %v1926_v28, %v1928_v30  ;;  %v381_v39 = vmul.f32 %v2923_v3, %v289_v24 }
  0x25   : > { %v1792_v40 = vadd.f32 %v1683_v27, %v1546_v31  ;;  %v492_v42 = vrot.slane %v379_v33, 1  ;;  %v493_v44 = vrot.slane %v380_v35, 1  ;;  %v626_v45 = vmul.f32 %v2933_v4, %v287_v17 }
  0x26   : > { %v2037_v46 = vadd.f32 %v1927_v37, %v1791_v36  ;;  %v495_v47 = vrot.slane %v381_v39, 1  ;;  %v627_v49 = vmul.f32 %v2933_v4, %v288_v20  ;;  %v628_v50 = vmul.f32 %v2933_v4, %v289_v24 }
  0x27   : > { %v2038_v52 = vadd.f32 %v1929_v38, %v1792_v40  ;;  %v494_v53 = vsel %vm451_vm1, %v492_v42, %v493_v44  ;;  %v739_v55 = vrot.slane %v626_v45, 2  ;;  %v916_v56 = vmul.f32 %v2938_v5, %v3047_v51  ;;  %v3077_v38 = vld [vmem:[%s2928_s6 + $0xf0] sm:$0xff] }
  0x28   : > { %v2076_v57 = vadd.f32 %v3041_v41, %v2037_v46  ;;  %v496_v58 = vsel %vm451_vm1, %v493_v44, %v495_v47  ;;  %v580_v60 = vadd.f32 %v494_v53, %v333_v25  ;;  %v740_v61 = vrot.slane %v627_v49, 2  ;;  %v3080_v44 = vld [vmem:[%s2928_s6 + $0xf8] sm:$0xff] }
  0x29   : > { %v2077_v0 = vadd.f32 %v3041_v41, %v2038_v52  ;;  %v581_v1 = vadd.f32 %v496_v58, %v334_v32  ;;  %v742_v6 = vrot.slane %v628_v50, 2  ;;  %v917_v7 = vmul.f32 %v2938_v5, %v3055_v62  ;;  %v2691_v32 = vld [vmem:[%s2928_s6 + $0x100] sm:$0x3] }
  0x2a   : > { %v2108_v8 = vmax.f32 %v2076_v57, 0.0  ;;  %v741_v10 = vsel %vm698_vm2, %v739_v55, %v740_v61  ;;  %v994_v11 = vmul.f32 %v2946_v9, %v3047_v51  ;;  %v995_v12 = vmul.f32 %v2946_v9, %v3055_v62 }
  0x2b   : > { %v2109_v13 = vmax.f32 %v2077_v0, 0.0  ;;  %v743_v14 = vsel %vm698_vm2, %v740_v61, %v742_v6  ;;  %v827_v15 = vadd.f32 %v741_v10, %v580_v60  ;;  %v996_v16 = vmul.f32 %v2946_v9, %v2640_v63 }
  0x2c   : > { %v2140_v17 = vmin.f32 %v2108_v8, 6.0  ;;  %v828_v20 = vadd.f32 %v743_v14, %v581_v1  ;;  %v1106_v21 = vrot.slane %v994_v11, 1  ;;  %v1107_v22 = vrot.slane %v995_v12, 1  ;;  %v268_v11 = vld [vmem:[%s2928_s6 + $0x28] sm:$0x3] }
  0x2d   : > { %v2141_v23 = vmin.f32 %v2109_v13, 6.0  ;;  %v948_v24 = vadd.f32 %v916_v56, %v827_v15  ;;  %v1109_v25 = vrot.slane %v996_v16, 1  ;;  %v1240_v26 = vmul.f32 %v2970_v29, %v3047_v51 }
  0x2e   : > { %v949_v27 = vadd.f32 %v917_v7, %v828_v20  ;;  %v1108_v28 = vsel %vm451_vm1, %v1106_v21, %v1107_v22  ;;  %v1241_v30 = vmul.f32 %v2970_v29, %v3055_v62  ;;  %v1242_v31 = vmul.f32 %v2970_v29, %v2640_v63 }
  0x2f   : > { %v2172_v33 = vpack.c.bf16 %v2141_v23, %v2140_v17  ;;  %v1110_v35 = vsel %vm451_vm1, %v1107_v22, %v1109_v25  ;;  %v1194_v36 = vadd.f32 %v1108_v28, %v948_v24  ;;  %v1352_v37 = vrot.slane %v1240_v26, 2 }
  0x30   : > { %v1195_v39 = vadd.f32 %v1110_v35, %v949_v27  ;;  %v1353_v40 = vrot.slane %v1241_v30, 2  ;;  %v1355_v42 = vrot.slane %v1242_v31, 2  ;;  %v1529_v45 = vmul.f32 %v2981_v34, %v3077_v38 }
  0x31   : > { %2756 = vmatprep.mubr.msk.bf16.mxu0 %vm2196_vm3, %v2172_v33  ;;  %v1530_v46 = vmul.f32 %v2981_v34, %v3080_v44  ;;  %v1607_v47 = vmul.f32 %v2989_v43, %v3077_v38  ;;  %v1608_v49 = vmul.f32 %v2989_v43, %v3080_v44  ;;  %v1609_v50 = vmul.f32 %v2989_v43, %v2691_v32 }
  0x32   : > { %v1354_v52 = vsel %vm698_vm2, %v1352_v37, %v1353_v40  ;;  %v1356_v53 = vsel %vm698_vm2, %v1353_v40, %v1355_v42  ;;  %v1853_v55 = vmul.f32 %v3007_v54, %v3077_v38  ;;  %v1854_v56 = vmul.f32 %v3007_v54, %v3080_v44 }
  0x33   : > { %v1440_v57 = vadd.f32 %v1354_v52, %v1194_v36  ;;  %v1441_v58 = vadd.f32 %v1356_v53, %v1195_v39  ;;  %v1719_v60 = vrot.slane %v1607_v47, 1  ;;  %v1720_v61 = vrot.slane %v1608_v49, 1  ;;  %v2619_v47 = vld [vmem:[%s2928_s6 + $0x40] sm:$0x3] }
  0x34   : > { %v1722_v63 = vrot.slane %v1609_v50, 1  ;;  %v1855_v0 = vmul.f32 %v3007_v54, %v2691_v32  ;;  %v1965_v1 = vrot.slane %v1853_v55, 2  ;;  %v1966_v6 = vrot.slane %v1854_v56, 2 }
  0x35   : > { %v1561_v7 = vadd.f32 %v1529_v45, %v1440_v57  ;;  %v1562_v8 = vadd.f32 %v1530_v46, %v1441_v58  ;;  %v1721_v10 = vsel %vm451_vm1, %v1719_v60, %v1720_v61  ;;  %v319_v12 = vmul.f32 %v2957_v18, %v2918_v2 }
  0x36   : > { %v1723_v13 = vsel %vm451_vm1, %v1720_v61, %v1722_v63  ;;  %v1967_v14 = vsel %vm698_vm2, %v1965_v1, %v1966_v6  ;;  %v1968_v15 = vrot.slane %v1855_v0, 2  ;;  %v320_v16 = vmul.f32 %v2960_v19, %v2918_v2 }
  0x37   : > { %v1807_v17 = vadd.f32 %v1721_v10, %v1561_v7  ;;  %v1808_v20 = vadd.f32 %v1723_v13, %v1562_v8  ;;  %v358_v21 = vmul.f32 %v2957_v18, %v2923_v3  ;;  %v359_v22 = vmul.f32 %v2960_v19, %v2923_v3 }
  0x38   : > { %v1969_v23 = vsel %vm698_vm2, %v1966_v6, %v1968_v15  ;;  %v360_v24 = vmul.f32 %v2923_v3, %v268_v11  ;;  %v605_v25 = vmul.f32 %v2957_v18, %v2933_v4  ;;  %v606_v26 = vmul.f32 %v2960_v19, %v2933_v4 }
  0x39   : > { %v2053_v27 = vadd.f32 %v1967_v14, %v1807_v17  ;;  %v2054_v28 = vadd.f32 %v1969_v23, %v1808_v20  ;;  %v457_v30 = vrot.slane %v358_v21, 1  ;;  %v458_v31 = vrot.slane %v359_v22, 1  ;;  %v3139_v14 = vld [vmem:[%s2928_s6 + $0x48] sm:$0xff]  ;;  %v3144_v20 = vld [vmem:[%s2928_s6 + $0x50] sm:$0xff]  ;;  %v2670_v21 = vld [vmem:[%s2928_s6 + $0x58] sm:$0x3] }
  0x3a   : > { %v460_v32 = vrot.slane %v360_v24, 1  ;;  %v607_v33 = vmul.f32 %v2933_v4, %v268_v11  ;;  %v704_v35 = vrot.slane %v605_v25, 2  ;;  %v705_v36 = vrot.slane %v606_v26, 2 }
  0x3b   : > { %v2092_v37 = vadd.f32 %v3041_v41, %v2053_v27  ;;  %v2093_v39 = vadd.f32 %v3041_v41, %v2054_v28  ;;  %v459_v40 = vsel %vm451_vm1, %v457_v30, %v458_v31  ;;  %v902_v18 = vmul.f32 %v2997_v48, %v2938_v5 }
  0x3c   : > { %v461_v19 = vsel %vm451_vm1, %v458_v31, %v460_v32  ;;  %v566_v42 = vadd.f32 %v459_v40, %v319_v12  ;;  %v706_v45 = vsel %vm698_vm2, %v704_v35, %v705_v36  ;;  %v707_v46 = vrot.slane %v607_v33, 2 }
  0x3d   : > { %v2124_v49 = vmax.f32 %v2092_v37, 0.0  ;;  %v2125_v50 = vmax.f32 %v2093_v39, 0.0  ;;  %v567_v52 = vadd.f32 %v461_v19, %v320_v16  ;;  %v903_v53 = vmul.f32 %v3010_v59, %v2938_v5 }
  0x3e   : > { %v708_v55 = vsel %vm698_vm2, %v705_v36, %v707_v46  ;;  %v813_v56 = vadd.f32 %v706_v45, %v566_v42  ;;  %v973_v57 = vmul.f32 %v2997_v48, %v2946_v9  ;;  %v974_v58 = vmul.f32 %v3010_v59, %v2946_v9 }
  0x3f   : > { %v2156_v60 = vmin.f32 %v2124_v49, 6.0  ;;  %v2157_v61 = vmin.f32 %v2125_v50, 6.0  ;;  %v814_v63 = vadd.f32 %v708_v55, %v567_v52  ;;  %v975_v0 = vmul.f32 %v2946_v9, %v2619_v47  ;;  %v292_v52 = vld [vmem:[%s2928_s6 + $0xe8] sm:$0x3] }
  0x40   : > { %v934_v1 = vadd.f32 %v902_v18, %v813_v56  ;;  %v1071_v6 = vrot.slane %v973_v57, 1  ;;  %v1072_v7 = vrot.slane %v974_v58, 1  ;;  %v1219_v8 = vmul.f32 %v2997_v48, %v2970_v29 }
  0x41   : > { %v2180_v10 = vpack.c.bf16 %v2157_v61, %v2156_v60  ;;  %v935_v11 = vadd.f32 %v903_v53, %v814_v63  ;;  %v1074_v12 = vrot.slane %v975_v0, 1  ;;  %v1220_v13 = vmul.f32 %v3010_v59, %v2970_v29 }
  0x42   : > { %v1073_v15 = vsel %vm451_vm1, %v1071_v6, %v1072_v7  ;;  %v1221_v16 = vmul.f32 %v2970_v29, %v2619_v47  ;;  %v1317_v17 = vrot.slane %v1219_v8, 2  ;;  %v1515_v22 = vmul.f32 %v2981_v34, %v3139_v14 }
  0x43   : > { %2772 = vmatprep.mubr.msk.bf16.mxu1 %vm2196_vm3, %v2180_v10  ;;  %v1075_v23 = vsel %vm451_vm1, %v1072_v7, %v1074_v12  ;;  %v1180_v24 = vadd.f32 %v1073_v15, %v934_v1  ;;  %v1318_v25 = vrot.slane %v1220_v13, 2  ;;  %v1516_v26 = vmul.f32 %v2981_v34, %v3144_v20 }
  0x44   : > { %v1181_v27 = vadd.f32 %v1075_v23, %v935_v11  ;;  %v1320_v28 = vrot.slane %v1221_v16, 2  ;;  %v1586_v30 = vmul.f32 %v2989_v43, %v3139_v14  ;;  %v1587_v31 = vmul.f32 %v2989_v43, %v3144_v20 }
  0x45   : > { %v1319_v32 = vsel %vm698_vm2, %v1317_v17, %v1318_v25  ;;  %v1588_v33 = vmul.f32 %v2989_v43, %v2670_v21  ;;  %v1832_v35 = vmul.f32 %v3007_v54, %v3139_v14  ;;  %v1833_v36 = vmul.f32 %v3007_v54, %v3144_v20 }
  0x46   : > { %v1321_v37 = vsel %vm698_vm2, %v1318_v25, %v1320_v28  ;;  %v1426_v39 = vadd.f32 %v1319_v32, %v1180_v24  ;;  %v1684_v40 = vrot.slane %v1586_v30, 1  ;;  %v1685_v18 = vrot.slane %v1587_v31, 1 }
  0x47   : > { %v1427_v19 = vadd.f32 %v1321_v37, %v1181_v27  ;;  %v1687_v42 = vrot.slane %v1588_v33, 1  ;;  %v1834_v45 = vmul.f32 %v3007_v54, %v2670_v21  ;;  %v1930_v46 = vrot.slane %v1832_v35, 2 }
  0x48   : > { %v1547_v47 = vadd.f32 %v1515_v22, %v1426_v39  ;;  %v1686_v49 = vsel %vm451_vm1, %v1684_v40, %v1685_v18  ;;  %v1931_v50 = vrot.slane %v1833_v36, 2  ;;  %v335_v53 = vmul.f32 %v3047_v51, %v2918_v2 }
  0x49   : > { %v1548_v55 = vadd.f32 %v1516_v26, %v1427_v19  ;;  %v1688_v56 = vsel %vm451_vm1, %v1685_v18, %v1687_v42  ;;  %v1933_v57 = vrot.slane %v1834_v45, 2  ;;  %v336_v58 = vmul.f32 %v3055_v62, %v2918_v2 }
  0x4a   : > { %v1793_v60 = vadd.f32 %v1686_v49, %v1547_v47  ;;  %v1932_v61 = vsel %vm698_vm2, %v1930_v46, %v1931_v50  ;;  %v382_v63 = vmul.f32 %v3047_v51, %v2923_v3  ;;  %v383_v0 = vmul.f32 %v3055_v62, %v2923_v3 }
  0x4b   : > { %v1794_v1 = vadd.f32 %v1688_v56, %v1548_v55  ;;  %v1934_v6 = vsel %vm698_vm2, %v1931_v50, %v1933_v57  ;;  %v384_v7 = vmul.f32 %v2923_v3, %v292_v52  ;;  %v629_v8 = vmul.f32 %v3047_v51, %v2933_v4  ;;  %v3205_v56 = vld [vmem:[%s2928_s6 + $0x108] sm:$0xff] }
  0x4c   : > { %v2039_v10 = vadd.f32 %v1932_v61, %v1793_v60  ;;  %v497_v11 = vrot.slane %v382_v63, 1  ;;  %v498_v12 = vrot.slane %v383_v0, 1  ;;  %v630_v13 = vmul.f32 %v3055_v62, %v2933_v4  ;;  %v2643_v62 = vld [vmem:[%s2928_s6 + $0x100] sm:$0x3]  ;;  %v3209_v61 = vld [vmem:[%s2928_s6 + $0x110] sm:$0xff] }
  0x4d   : > { %v2040_v15 = vadd.f32 %v1934_v6, %v1794_v1  ;;  %v500_v16 = vrot.slane %v384_v7, 1  ;;  %v631_v17 = vmul.f32 %v2933_v4, %v292_v52  ;;  %v744_v21 = vrot.slane %v629_v8, 2  ;;  %v2694_v63 = vld [vmem:[%s2928_s6 + $0x118] sm:$0x3] }
  0x4e   : > { %v2078_v22 = vadd.f32 %v3041_v41, %v2039_v10  ;;  %v499_v23 = vsel %vm451_vm1, %v497_v11, %v498_v12  ;;  %v745_v24 = vrot.slane %v630_v13, 2  ;;  %v918_v51 = vmul.f32 %v3077_v38, %v2938_v5 }
  0x4f   : > { %v2079_v25 = vadd.f32 %v3041_v41, %v2040_v15  ;;  %v501_v26 = vsel %vm451_vm1, %v498_v12, %v500_v16  ;;  %v582_v27 = vadd.f32 %v499_v23, %v335_v53  ;;  %v747_v28 = vrot.slane %v631_v17, 2 }
  0x50   : > { %v2110_v30 = vmax.f32 %v2078_v22, 0.0  ;;  %v583_v31 = vadd.f32 %v501_v26, %v336_v58  ;;  %v746_v32 = vsel %vm698_vm2, %v744_v21, %v745_v24  ;;  %v919_v33 = vmul.f32 %v3080_v44, %v2938_v5 }
  0x51   : > { %v2111_v35 = vmax.f32 %v2079_v25, 0.0  ;;  %v748_v36 = vsel %vm698_vm2, %v745_v24, %v747_v28  ;;  %v829_v37 = vadd.f32 %v746_v32, %v582_v27  ;;  %v997_v39 = vmul.f32 %v3077_v38, %v2946_v9  ;;  %v271_v32 = vld [vmem:[%s2928_s6 + $0x40] sm:$0x3] }
  0x52   : > { %v2142_v40 = vmin.f32 %v2110_v30, 6.0  ;;  %v830_v18 = vadd.f32 %v748_v36, %v583_v31  ;;  %v998_v19 = vmul.f32 %v3080_v44, %v2946_v9  ;;  %v999_v42 = vmul.f32 %v2946_v9, %v2643_v62 }
  0x53   : > { %v2143_v45 = vmin.f32 %v2111_v35, 6.0  ;;  %v950_v46 = vadd.f32 %v918_v51, %v829_v37  ;;  %v1111_v47 = vrot.slane %v997_v39, 1  ;;  %v1243_v49 = vmul.f32 %v3077_v38, %v2970_v29 }
  0x54   : > { %v951_v50 = vadd.f32 %v919_v33, %v830_v18  ;;  %v1112_v52 = vrot.slane %v998_v19, 1  ;;  %v1114_v53 = vrot.slane %v999_v42, 1  ;;  %v1244_v55 = vmul.f32 %v3080_v44, %v2970_v29 }
  0x55   : > { %v2173_v57 = vpack.c.bf16 %v2143_v45, %v2142_v40  ;;  %v1245_v58 = vmul.f32 %v2970_v29, %v2643_v62  ;;  %v1357_v60 = vrot.slane %v1243_v49, 2  ;;  %v1531_v0 = vmul.f32 %v2981_v34, %v3205_v56 }
  0x56   : > { %v1113_v1 = vsel %vm451_vm1, %v1111_v47, %v1112_v52  ;;  %v1115_v6 = vsel %vm451_vm1, %v1112_v52, %v1114_v53  ;;  %v1358_v7 = vrot.slane %v1244_v55, 2  ;;  %v1532_v8 = vmul.f32 %v2981_v34, %v3209_v61 }
  0x57   : > { %2757 = vmatmul.mubr.msk.bf16.vlgmr.msra.gmra.mrb[0].mxu0 %vm2196_vm3, %v2173_v57  ;;  %v1196_v10 = vadd.f32 %v1113_v1, %v950_v46  ;;  %v1197_v11 = vadd.f32 %v1115_v6, %v951_v50  ;;  %v1360_v12 = vrot.slane %v1245_v58, 2  ;;  %v1610_v13 = vmul.f32 %v2989_v43, %v3205_v56 }
  0x58   : > { %v1359_v15 = vsel %vm698_vm2, %v1357_v60, %v1358_v7  ;;  %v1611_v16 = vmul.f32 %v2989_v43, %v3209_v61  ;;  %v1612_v17 = vmul.f32 %v2989_v43, %v2694_v63  ;;  %v1856_v21 = vmul.f32 %v3007_v54, %v3205_v56 }
  0x59   : > { %v1361_v22 = vsel %vm698_vm2, %v1358_v7, %v1360_v12  ;;  %v1442_v23 = vadd.f32 %v1359_v15, %v1196_v10  ;;  %v1724_v24 = vrot.slane %v1610_v13, 1  ;;  %v1857_v51 = vmul.f32 %v3007_v54, %v3209_v61 }
  0x5a   : > { %v1443_v25 = vadd.f32 %v1361_v22, %v1197_v11  ;;  %v1725_v26 = vrot.slane %v1611_v16, 1  ;;  %v1727_v27 = vrot.slane %v1612_v17, 1  ;;  %v1858_v28 = vmul.f32 %v3007_v54, %v2694_v63  ;;  %v2622_v16 = vld [vmem:[%s2928_s6 + $0x58] sm:$0x3] }
  0x5b   : > { %v1563_v62 = vadd.f32 %v1531_v0, %v1442_v23  ;;  %v1970_v30 = vrot.slane %v1856_v21, 2  ;;  %v1971_v31 = vrot.slane %v1857_v51, 2  ;;  %v321_v33 = vmul.f32 %v2997_v48, %v2918_v2 }
  0x5c   : > { %v1564_v35 = vadd.f32 %v1532_v8, %v1443_v25  ;;  %v1726_v36 = vsel %vm451_vm1, %v1724_v24, %v1725_v26  ;;  %v1728_v37 = vsel %vm451_vm1, %v1725_v26, %v1727_v27  ;;  %v1973_v39 = vrot.slane %v1858_v28, 2 }
  0x5d   : > { %v1809_v40 = vadd.f32 %v1726_v36, %v1563_v62  ;;  %v1972_v18 = vsel %vm698_vm2, %v1970_v30, %v1971_v31  ;;  %v322_v19 = vmul.f32 %v3010_v59, %v2918_v2  ;;  %v361_v42 = vmul.f32 %v2997_v48, %v2923_v3 }
  0x5e   : > { %v1810_v45 = vadd.f32 %v1728_v37, %v1564_v35  ;;  %v1974_v46 = vsel %vm698_vm2, %v1971_v31, %v1973_v39  ;;  %v362_v47 = vmul.f32 %v3010_v59, %v2923_v3  ;;  %v363_v49 = vmul.f32 %v2923_v3, %v271_v32 }
  0x5f   : > { %v2055_v50 = vadd.f32 %v1972_v18, %v1809_v40  ;;  %v462_v52 = vrot.slane %v361_v42, 1  ;;  %v608_v53 = vmul.f32 %v2997_v48, %v2933_v4  ;;  %v609_v55 = vmul.f32 %v3010_v59, %v2933_v4  ;;  %v3272_v18 = vld [vmem:[%s2928_s6 + $0x60] sm:$0xff]  ;;  %v2673_v42 = vld [vmem:[%s2928_s6 + $0x70] sm:$0x3] }
  0x60   : > { %v2056_v57 = vadd.f32 %v1974_v46, %v1810_v45  ;;  %v463_v58 = vrot.slane %v362_v47, 1  ;;  %v465_v60 = vrot.slane %v363_v49, 1  ;;  %v610_v63 = vmul.f32 %v2933_v4, %v271_v32 }
  0x61   : > { %v2094_v0 = vadd.f32 %v3041_v41, %v2055_v50  ;;  %v709_v1 = vrot.slane %v608_v53, 2  ;;  %v710_v6 = vrot.slane %v609_v55, 2  ;;  %v904_v7 = vmul.f32 %v3139_v14, %v2938_v5 }
  0x62   : > { %v2095_v8 = vadd.f32 %v3041_v41, %v2056_v57  ;;  %v464_v48 = vsel %vm451_vm1, %v462_v52, %v463_v58  ;;  %v466_v10 = vsel %vm451_vm1, %v463_v58, %v465_v60  ;;  %v712_v59 = vrot.slane %v610_v63, 2 }
  0x63   : > { %v2126_v11 = vmax.f32 %v2094_v0, 0.0  ;;  %v568_v12 = vadd.f32 %v464_v48, %v321_v33  ;;  %v569_v13 = vadd.f32 %v466_v10, %v322_v19  ;;  %v711_v15 = vsel %vm698_vm2, %v709_v1, %v710_v6  ;;  %v3275_v19 = vld [vmem:[%s2928_s6 + $0x68] sm:$0xff] }
  0x64   : > { %v2127_v17 = vmax.f32 %v2095_v8, 0.0  ;;  %v713_v21 = vsel %vm698_vm2, %v710_v6, %v712_v59  ;;  %v905_v22 = vmul.f32 %v3144_v20, %v2938_v5  ;;  %v976_v23 = vmul.f32 %v3139_v14, %v2946_v9 }
  0x65   : > { %v2158_v24 = vmin.f32 %v2126_v11, 6.0  ;;  %v815_v51 = vadd.f32 %v711_v15, %v568_v12  ;;  %v816_v25 = vadd.f32 %v713_v21, %v569_v13  ;;  %v977_v26 = vmul.f32 %v3144_v20, %v2946_v9  ;;  %v295_v15 = vld [vmem:[%s2928_s6 + $0x100] sm:$0x3] }
  0x66   : > { %v2159_v27 = vmin.f32 %v2127_v17, 6.0  ;;  %v978_v28 = vmul.f32 %v2946_v9, %v2622_v16  ;;  %v1076_v62 = vrot.slane %v976_v23, 1  ;;  %v1222_v30 = vmul.f32 %v3139_v14, %v2970_v29 }
  0x67   : > { %v936_v31 = vadd.f32 %v904_v7, %v815_v51  ;;  %v937_v32 = vadd.f32 %v905_v22, %v816_v25  ;;  %v1077_v33 = vrot.slane %v977_v26, 1  ;;  %v1223_v35 = vmul.f32 %v3144_v20, %v2970_v29 }
  0x68   : > { %v2181_v36 = vpack.c.bf16 %v2159_v27, %v2158_v24  ;;  %v1079_v37 = vrot.slane %v978_v28, 1  ;;  %v1224_v39 = vmul.f32 %v2970_v29, %v2622_v16  ;;  %v1322_v40 = vrot.slane %v1222_v30, 2 }
  0x69   : > { %v1078_v45 = vsel %vm451_vm1, %v1076_v62, %v1077_v33  ;;  %v1323_v46 = vrot.slane %v1223_v35, 2  ;;  %v1517_v47 = vmul.f32 %v2981_v34, %v3272_v18  ;;  %v1518_v49 = vmul.f32 %v2981_v34, %v3275_v19 }
  0x6a   : > { %2773 = vmatmul.mubr.msk.bf16.vlgmr.msra.gmra.mrb[0].mxu1 %vm2196_vm3, %v2181_v36  ;;  %v1080_v50 = vsel %vm451_vm1, %v1077_v33, %v1079_v37  ;;  %v1182_v52 = vadd.f32 %v1078_v45, %v936_v31  ;;  %v1325_v53 = vrot.slane %v1224_v39, 2  ;;  %v1589_v55 = vmul.f32 %v2989_v43, %v3272_v18 }
  0x6b   : > { %v1183_v57 = vadd.f32 %v1080_v50, %v937_v32  ;;  %v1324_v58 = vsel %vm698_vm2, %v1322_v40, %v1323_v46  ;;  %v1590_v60 = vmul.f32 %v2989_v43, %v3275_v19  ;;  %v1591_v63 = vmul.f32 %v2989_v43, %v2673_v42 }
  0x6c   : > { %v1326_v0 = vsel %vm698_vm2, %v1323_v46, %v1325_v53  ;;  %v1428_v1 = vadd.f32 %v1324_v58, %v1182_v52  ;;  %v1689_v6 = vrot.slane %v1589_v55, 1  ;;  %v1835_v7 = vmul.f32 %v3007_v54, %v3272_v18 }
  0x6d   : > { %v1429_v8 = vadd.f32 %v1326_v0, %v1183_v57  ;;  %v1690_v48 = vrot.slane %v1590_v60, 1  ;;  %v1692_v10 = vrot.slane %v1591_v63, 1  ;;  %v1836_v59 = vmul.f32 %v3007_v54, %v3275_v19 }
  0x6e   : > { %v1549_v11 = vadd.f32 %v1517_v47, %v1428_v1  ;;  %v1837_v12 = vmul.f32 %v3007_v54, %v2673_v42  ;;  %v1935_v13 = vrot.slane %v1835_v7, 2  ;;  %v337_v16 = vmul.f32 %v3077_v38, %v2918_v2 }
  0x6f   : > { %v1550_v17 = vadd.f32 %v1518_v49, %v1429_v8  ;;  %v1691_v21 = vsel %vm451_vm1, %v1689_v6, %v1690_v48  ;;  %v1693_v22 = vsel %vm451_vm1, %v1690_v48, %v1692_v10  ;;  %v1936_v23 = vrot.slane %v1836_v59, 2 }
  0x70   : > { %v1795_v24 = vadd.f32 %v1691_v21, %v1549_v11  ;;  %v1938_v51 = vrot.slane %v1837_v12, 2  ;;  %v338_v25 = vmul.f32 %v3080_v44, %v2918_v2  ;;  %v385_v26 = vmul.f32 %v3077_v38, %v2923_v3 }
  0x71   : > { %v1796_v27 = vadd.f32 %v1693_v22, %v1550_v17  ;;  %v1937_v28 = vsel %vm698_vm2, %v1935_v13, %v1936_v23  ;;  %v386_v62 = vmul.f32 %v3080_v44, %v2923_v3  ;;  %v387_v30 = vmul.f32 %v2923_v3, %v295_v15 }
  0x72   : > { %v1939_v31 = vsel %vm698_vm2, %v1936_v23, %v1938_v51  ;;  %v2041_v32 = vadd.f32 %v1937_v28, %v1795_v24  ;;  %v502_v33 = vrot.slane %v385_v26, 1  ;;  %v632_v35 = vmul.f32 %v3077_v38, %v2933_v4  ;;  %v3338_v23 = vld [vmem:[%s2928_s6 + $0x120] sm:$0xff]  ;;  %v2697_v26 = vld [vmem:[%s2928_s6 + $0x130] sm:$0x3] }
  0x73   : > { %v2042_v36 = vadd.f32 %v1939_v31, %v1796_v27  ;;  %v503_v37 = vrot.slane %v386_v62, 1  ;;  %v505_v39 = vrot.slane %v387_v30, 1  ;;  %v633_v40 = vmul.f32 %v3080_v44, %v2933_v4  ;;  %v2646_v44 = vld [vmem:[%s2928_s6 + $0x118] sm:$0x3] }
  0x74   : > { %v2080_v42 = vadd.f32 %v3041_v41, %v2041_v32  ;;  %v634_v45 = vmul.f32 %v2933_v4, %v295_v15  ;;  %v749_v46 = vrot.slane %v632_v35, 2  ;;  %v920_v47 = vmul.f32 %v3205_v56, %v2938_v5 }
  0x75   : > { %v2081_v49 = vadd.f32 %v3041_v41, %v2042_v36  ;;  %v504_v50 = vsel %vm451_vm1, %v502_v33, %v503_v37  ;;  %v506_v38 = vsel %vm451_vm1, %v503_v37, %v505_v39  ;;  %v750_v52 = vrot.slane %v633_v40, 2 }
  0x76   : > { %v2112_v53 = vmax.f32 %v2080_v42, 0.0  ;;  %v584_v55 = vadd.f32 %v504_v50, %v337_v16  ;;  %v585_v57 = vadd.f32 %v506_v38, %v338_v25  ;;  %v752_v58 = vrot.slane %v634_v45, 2  ;;  %v3342_v25 = vld [vmem:[%s2928_s6 + $0x128] sm:$0xff] }
  0x77   : > { %v2113_v60 = vmax.f32 %v2081_v49, 0.0  ;;  %v751_v63 = vsel %vm698_vm2, %v749_v46, %v750_v52  ;;  %v921_v4 = vmul.f32 %v3209_v61, %v2938_v5  ;;  %v1000_v0 = vmul.f32 %v3205_v56, %v2946_v9 }
  0x78   : > { %v2144_v1 = vmin.f32 %v2112_v53, 6.0  ;;  %v753_v6 = vsel %vm698_vm2, %v750_v52, %v752_v58  ;;  %v831_v7 = vadd.f32 %v751_v63, %v584_v55  ;;  %v1001_v8 = vmul.f32 %v3209_v61, %v2946_v9 }
  0x79   : > { %v2145_v48 = vmin.f32 %v2113_v60, 6.0  ;;  %v832_v10 = vadd.f32 %v753_v6, %v585_v57  ;;  %v1002_v59 = vmul.f32 %v2946_v9, %v2646_v44  ;;  %v1116_v11 = vrot.slane %v1000_v0, 1  ;;  %v274_v57 = vld [vmem:[%s2928_s6 + $0x58] sm:$0x3] }
  0x7a   : > { %v952_v12 = vadd.f32 %v920_v47, %v831_v7  ;;  %v1117_v5 = vrot.slane %v1001_v8, 1  ;;  %v1246_v13 = vmul.f32 %v3205_v56, %v2970_v29  ;;  %v1247_v15 = vmul.f32 %v3209_v61, %v2970_v29 }
  0x7b   : > { %v2174_v16 = vpack.c.bf16 %v2145_v48, %v2144_v1  ;;  %v953_v17 = vadd.f32 %v921_v4, %v832_v10  ;;  %v1119_v21 = vrot.slane %v1002_v59, 1  ;;  %v1248_v22 = vmul.f32 %v2970_v29, %v2646_v44  ;;  %v3376_v1 = vld [vmem:[%s4239_s1 + $0x1] ss:$0 sm:$0xff] }
  0x7c   : > { %v1118_v24 = vsel %vm451_vm1, %v1116_v11, %v1117_v5  ;;  %v1362_v51 = vrot.slane %v1246_v13, 2  ;;  %v1363_v9 = vrot.slane %v1247_v15, 2  ;;  %v1533_v27 = vmul.f32 %v2981_v34, %v3338_v23 }
  0x7d   : > { %2760 = vmatprep.mubr.msk.bf16.mxu0 %vm2196_vm3, %v2174_v16  ;;  %v1120_v28 = vsel %vm451_vm1, %v1117_v5, %v1119_v21  ;;  %v1198_v62 = vadd.f32 %v1118_v24, %v952_v12  ;;  %v1365_v30 = vrot.slane %v1248_v22, 2  ;;  %v1534_v29 = vmul.f32 %v2981_v34, %v3342_v25 }
  0x7e   : > { %v1199_v31 = vadd.f32 %v1120_v28, %v953_v17  ;;  %v1364_v32 = vsel %vm698_vm2, %v1362_v51, %v1363_v9  ;;  %v1613_v33 = vmul.f32 %v2989_v43, %v3338_v23  ;;  %v1614_v35 = vmul.f32 %v2989_v43, %v3342_v25 }
  0x7f   : > { %v1366_v36 = vsel %vm698_vm2, %v1363_v9, %v1365_v30  ;;  %v1444_v37 = vadd.f32 %v1364_v32, %v1198_v62  ;;  %v1615_v39 = vmul.f32 %v2989_v43, %v2697_v26  ;;  %v1859_v40 = vmul.f32 %v3007_v54, %v3338_v23 }
  0x80   : > { %v1445_v42 = vadd.f32 %v1366_v36, %v1199_v31  ;;  %v1729_v34 = vrot.slane %v1613_v33, 1  ;;  %v1730_v45 = vrot.slane %v1614_v35, 1  ;;  %v1860_v46 = vmul.f32 %v3007_v54, %v3342_v25  ;;  %v3411_v35 = vld [vmem:[%s4239_s1 + $0x4] ss:$0 sm:$0xff] }
  0x81   : > { %v1565_v47 = vadd.f32 %v1533_v27, %v1444_v37  ;;  %v1732_v49 = vrot.slane %v1615_v39, 1  ;;  %v1861_v50 = vmul.f32 %v3007_v54, %v2697_v26  ;;  %v1975_v38 = vrot.slane %v1859_v40, 2  ;;  %v2625_v27 = vld [vmem:[%s2928_s6 + $0x70] sm:$0x3] }
  0x82   : > { %v1566_v52 = vadd.f32 %v1534_v29, %v1445_v42  ;;  %v1731_v53 = vsel %vm451_vm1, %v1729_v34, %v1730_v45  ;;  %v1976_v55 = vrot.slane %v1860_v46, 2  ;;  %v323_v43 = vmul.f32 %v3139_v14, %v2918_v2  ;;  %v3421_v46 = vld [vmem:[%s4239_s1 + $0x5] ss:$0 sm:$0xff] }
  0x83   : > { %v1733_v58 = vsel %vm451_vm1, %v1730_v45, %v1732_v49  ;;  %v1811_v44 = vadd.f32 %v1731_v53, %v1565_v47  ;;  %v1978_v60 = vrot.slane %v1861_v50, 2  ;;  %v324_v63 = vmul.f32 %v3144_v20, %v2918_v2  ;;  %v3385_v2 = vld [vmem:[%s4239_s1 + $0x2] ss:$0 sm:$0xff] }
  0x84   : > { %v1812_v4 = vadd.f32 %v1733_v58, %v1566_v52  ;;  %v1977_v0 = vsel %vm698_vm2, %v1975_v38, %v1976_v55  ;;  %v364_v54 = vmul.f32 %v3139_v14, %v2923_v3  ;;  %v365_v6 = vmul.f32 %v3376_v1, %v3144_v20 }
  0x85   : > { %v1979_v7 = vsel %vm698_vm2, %v1976_v55, %v1978_v60  ;;  %v2057_v8 = vadd.f32 %v1977_v0, %v1811_v44  ;;  %v366_v48 = vmul.f32 %v3376_v1, %v274_v57  ;;  %v611_v3 = vmul.f32 %v3385_v2, %v3139_v14  ;;  %v3398_v14 = vld [vmem:[%s4239_s1 + $0x3] ss:$0 sm:$0xff]  ;;  %v3428_v55 = vld [vmem:[%s2928_s6 + $0x78] sm:$0xff]  ;;  %v2676_v60 = vld [vmem:[%s2928_s6 + $0x88] sm:$0x3] }
  0x86   : > { %v2058_v10 = vadd.f32 %v1979_v7, %v1812_v4  ;;  %v467_v59 = vrot.slane %v364_v54, 1  ;;  %v468_v11 = vrot.slane %v365_v6, 1  ;;  %v612_v12 = vmul.f32 %v3385_v2, %v3144_v20  ;;  %v3432_v44 = vld [vmem:[%s2928_s6 + $0x80] sm:$0xff] }
  0x87   : > { %v2096_v5 = vadd.f32 %v3041_v41, %v2057_v8  ;;  %v470_v13 = vrot.slane %v366_v48, 1  ;;  %v613_v15 = vmul.f32 %v3385_v2, %v274_v57  ;;  %v714_v16 = vrot.slane %v611_v3, 2  ;;  %v3450_v7 = vld [vmem:[%s4239_s1 + $0x7] ss:$0 sm:$0xff] }
  0x88   : > { %v2097_v17 = vadd.f32 %v3041_v41, %v2058_v10  ;;  %v469_v21 = vsel %vm451_vm1, %v467_v59, %v468_v11  ;;  %v715_v22 = vrot.slane %v612_v12, 2  ;;  %v906_v24 = vmul.f32 %v3398_v14, %v3272_v18 }
  0x89   : > { %v2128_v20 = vmax.f32 %v2096_v5, 0.0  ;;  %v471_v51 = vsel %vm451_vm1, %v468_v11, %v470_v13  ;;  %v570_v9 = vadd.f32 %v469_v21, %v323_v43  ;;  %v717_v26 = vrot.slane %v613_v15, 2  ;;  %v3461_v13 = vld [vmem:[%s4239_s1 + $0x8] ss:$0 sm:$0xff] }
  0x8a   : > { %v2129_v28 = vmax.f32 %v2097_v17, 0.0  ;;  %v571_v62 = vadd.f32 %v471_v51, %v324_v63  ;;  %v716_v30 = vsel %vm698_vm2, %v714_v16, %v715_v22  ;;  %v907_v29 = vmul.f32 %v3398_v14, %v3275_v19  ;;  %v3438_v63 = vld [vmem:[%s4239_s1 + $0x6] ss:$0 sm:$0xff] }
  0x8b   : > { %v2160_v31 = vmin.f32 %v2128_v20, 6.0  ;;  %v718_v32 = vsel %vm698_vm2, %v715_v22, %v717_v26  ;;  %v817_v33 = vadd.f32 %v716_v30, %v570_v9  ;;  %v979_v36 = vmul.f32 %v3411_v35, %v3272_v18  ;;  %v3473_v30 = vld [vmem:[%s4239_s1] ss:$0 sm:$0xff] }
  0x8c   : > { %v2161_v37 = vmin.f32 %v2129_v28, 6.0  ;;  %v818_v39 = vadd.f32 %v718_v32, %v571_v62  ;;  %v980_v40 = vmul.f32 %v3411_v35, %v3275_v19  ;;  %v981_v42 = vmul.f32 %v3411_v35, %v2625_v27  ;;  %v298_v62 = vld [vmem:[%s2928_s6 + $0x118] sm:$0x3] }
  0x8d   : > { %v938_v34 = vadd.f32 %v906_v24, %v817_v33  ;;  %v1081_v45 = vrot.slane %v979_v36, 1  ;;  %v1225_v47 = vmul.f32 %v3421_v46, %v3272_v18  ;;  %v1226_v49 = vmul.f32 %v3421_v46, %v3275_v19 }
  0x8e   : > { %v2182_v50 = vpack.c.bf16 %v2161_v37, %v2160_v31  ;;  %v939_v38 = vadd.f32 %v907_v29, %v818_v39  ;;  %v1082_v52 = vrot.slane %v980_v40, 1  ;;  %v1084_v53 = vrot.slane %v981_v42, 1 }
  0x8f   : > { %v1227_v57 = vmul.f32 %v3421_v46, %v2625_v27  ;;  %v1327_v43 = vrot.slane %v1225_v47, 2  ;;  %v1328_v58 = vrot.slane %v1226_v49, 2  ;;  %v1519_v4 = vmul.f32 %v3438_v63, %v3428_v55 }
  0x90   : > { %2776 = vmatprep.mubr.msk.bf16.mxu1 %vm2196_vm3, %v2182_v50  ;;  %v1083_v0 = vsel %vm451_vm1, %v1081_v45, %v1082_v52  ;;  %v1085_v54 = vsel %vm451_vm1, %v1082_v52, %v1084_v53  ;;  %v1520_v6 = vmul.f32 %v3438_v63, %v3432_v44  ;;  %v1592_v8 = vmul.f32 %v3450_v7, %v3428_v55 }
  0x91   : > { %v1184_v48 = vadd.f32 %v1083_v0, %v938_v34  ;;  %v1185_v3 = vadd.f32 %v1085_v54, %v939_v38  ;;  %v1329_v10 = vsel %vm698_vm2, %v1327_v43, %v1328_v58  ;;  %v1330_v59 = vrot.slane %v1227_v57, 2 }
  0x92   : > { %v1593_v11 = vmul.f32 %v3450_v7, %v3432_v44  ;;  %v1594_v12 = vmul.f32 %v3450_v7, %v2676_v60  ;;  %v1694_v5 = vrot.slane %v1592_v8, 1  ;;  %v1838_v15 = vmul.f32 %v3461_v13, %v3428_v55 }
  0x93   : > { %v1331_v16 = vsel %vm698_vm2, %v1328_v58, %v1330_v59  ;;  %v1430_v17 = vadd.f32 %v1329_v10, %v1184_v48  ;;  %v1839_v21 = vmul.f32 %v3461_v13, %v3432_v44  ;;  %v1840_v22 = vmul.f32 %v3461_v13, %v2676_v60 }
  0x94   : > { %v1431_v24 = vadd.f32 %v1331_v16, %v1185_v3  ;;  %v1695_v20 = vrot.slane %v1593_v11, 1  ;;  %v1697_v51 = vrot.slane %v1594_v12, 1  ;;  %v1940_v9 = vrot.slane %v1838_v15, 2  ;;  %v2649_v3 = vld [vmem:[%s2928_s6 + $0x130] sm:$0x3] }
  0x95   : > { %v1551_v26 = vadd.f32 %v1519_v4, %v1430_v17  ;;  %v1941_v27 = vrot.slane %v1839_v21, 2  ;;  %v1943_v28 = vrot.slane %v1840_v22, 2  ;;  %v339_v29 = vmul.f32 %v3473_v30, %v3205_v56 }
  0x96   : > { %v1552_v31 = vadd.f32 %v1520_v6, %v1431_v24  ;;  %v1696_v32 = vsel %vm451_vm1, %v1694_v5, %v1695_v20  ;;  %v1698_v33 = vsel %vm451_vm1, %v1695_v20, %v1697_v51  ;;  %v340_v36 = vmul.f32 %v3473_v30, %v3209_v61 }
  0x97   : > { %v1797_v37 = vadd.f32 %v1696_v32, %v1551_v26  ;;  %v1942_v39 = vsel %vm698_vm2, %v1940_v9, %v1941_v27  ;;  %v1944_v40 = vsel %vm698_vm2, %v1941_v27, %v1943_v28  ;;  %v388_v42 = vmul.f32 %v3376_v1, %v3205_v56 }
  0x98   : > { %v1798_v34 = vadd.f32 %v1698_v33, %v1552_v31  ;;  %v389_v45 = vmul.f32 %v3376_v1, %v3209_v61  ;;  %v390_v47 = vmul.f32 %v3376_v1, %v298_v62  ;;  %v635_v49 = vmul.f32 %v3385_v2, %v3205_v56  ;;  %v3499_v56 = vld [vmem:[%s4241_s3] ss:$0 sm:$0xff] }
  0x99   : > { %v2043_v50 = vadd.f32 %v1942_v39, %v1797_v37  ;;  %v507_v38 = vrot.slane %v388_v42, 1  ;;  %v636_v52 = vmul.f32 %v3385_v2, %v3209_v61  ;;  %v637_v53 = vmul.f32 %v3385_v2, %v298_v62  ;;  %v3521_v39 = vld [vmem:[%s2928_s6 + $0x138] sm:$0xff] }
  0x9a   : > { %v2044_v57 = vadd.f32 %v1944_v40, %v1798_v34  ;;  %v508_v43 = vrot.slane %v389_v45, 1  ;;  %v510_v58 = vrot.slane %v390_v47, 1  ;;  %v754_v60 = vrot.slane %v635_v49, 2  ;;  %v2700_v40 = vld [vmem:[%s2928_s6 + $0x148] sm:$0x3]  ;;  %v3526_v47 = vld [vmem:[%s2928_s6 + $0x140] sm:$0xff] }
  0x9b   : > { %v2082_v4 = vadd.f32 %v3041_v41, %v2043_v50  ;;  %v755_v0 = vrot.slane %v636_v52, 2  ;;  %v757_v54 = vrot.slane %v637_v53, 2  ;;  %v922_v6 = vmul.f32 %v3398_v14, %v3338_v23 }
  0x9c   : > { %v2083_v61 = vadd.f32 %v3499_v56, %v2044_v57  ;;  %v509_v8 = vsel %vm451_vm1, %v507_v38, %v508_v43  ;;  %v511_v48 = vsel %vm451_vm1, %v508_v43, %v510_v58  ;;  %v923_v41 = vmul.f32 %v3398_v14, %v3342_v25 }
  0x9d   : > { %v2114_v10 = vmax.f32 %v2082_v4, 0.0  ;;  %v586_v59 = vadd.f32 %v509_v8, %v339_v29  ;;  %v587_v11 = vadd.f32 %v511_v48, %v340_v36  ;;  %v756_v12 = vsel %vm698_vm2, %v754_v60, %v755_v0 }
  0x9e   : > { %v2115_v5 = vmax.f32 %v2083_v61, 0.0  ;;  %v758_v15 = vsel %vm698_vm2, %v755_v0, %v757_v54  ;;  %v1003_v16 = vmul.f32 %v3411_v35, %v3338_v23  ;;  %v1004_v17 = vmul.f32 %v3411_v35, %v3342_v25 }
  0x9f   : > { %v2146_v21 = vmin.f32 %v2114_v10, 6.0  ;;  %v833_v22 = vadd.f32 %v756_v12, %v586_v59  ;;  %v834_v24 = vadd.f32 %v758_v15, %v587_v11  ;;  %v1005_v20 = vmul.f32 %v3411_v35, %v2649_v3  ;;  %v277_v11 = vld [vmem:[%s2928_s6 + $0x70] sm:$0x3] }
  0xa0   : > { %v2147_v51 = vmin.f32 %v2115_v5, 6.0  ;;  %v1121_v9 = vrot.slane %v1003_v16, 1  ;;  %v1122_v26 = vrot.slane %v1004_v17, 1  ;;  %v1249_v27 = vmul.f32 %v3421_v46, %v3338_v23 }
  0xa1   : > { %v954_v28 = vadd.f32 %v922_v6, %v833_v22  ;;  %v955_v62 = vadd.f32 %v923_v41, %v834_v24  ;;  %v1124_v29 = vrot.slane %v1005_v20, 1  ;;  %v1250_v31 = vmul.f32 %v3421_v46, %v3342_v25 }
  0xa2   : > { %v2175_v32 = vpack.c.bf16 %v2147_v51, %v2146_v21  ;;  %v1123_v33 = vsel %vm451_vm1, %v1121_v9, %v1122_v26  ;;  %v1251_v36 = vmul.f32 %v3421_v46, %v2649_v3  ;;  %v1367_v37 = vrot.slane %v1249_v27, 2 }
  0xa3   : > { %v1125_v42 = vsel %vm451_vm1, %v1122_v26, %v1124_v29  ;;  %v1200_v34 = vadd.f32 %v1123_v33, %v954_v28  ;;  %v1368_v45 = vrot.slane %v1250_v31, 2  ;;  %v1535_v49 = vmul.f32 %v3438_v63, %v3521_v39 }
  0xa4   : > { %2761 = vmatmul.mubr.msk.bf16.gmra.mrb[4].mxu0 %vm2196_vm3, %v2175_v32  ;;  %v1201_v50 = vadd.f32 %v1125_v42, %v955_v62  ;;  %v1370_v38 = vrot.slane %v1251_v36, 2  ;;  %v1536_v52 = vmul.f32 %v3438_v63, %v3526_v47  ;;  %v1616_v53 = vmul.f32 %v3450_v7, %v3521_v39 }
  0xa5   : > { %v1369_v57 = vsel %vm698_vm2, %v1367_v37, %v1368_v45  ;;  %v1617_v43 = vmul.f32 %v3450_v7, %v3526_v47  ;;  %v1618_v58 = vmul.f32 %v3450_v7, %v2700_v40  ;;  %v1862_v60 = vmul.f32 %v3461_v13, %v3521_v39 }
  0xa6   : > { %v1371_v4 = vsel %vm698_vm2, %v1368_v45, %v1370_v38  ;;  %v1446_v0 = vadd.f32 %v1369_v57, %v1200_v34  ;;  %v1734_v54 = vrot.slane %v1616_v53, 1  ;;  %v1863_v6 = vmul.f32 %v3461_v13, %v3526_v47 }
  0xa7   : > { %v1447_v61 = vadd.f32 %v1371_v4, %v1201_v50  ;;  %v1735_v8 = vrot.slane %v1617_v43, 1  ;;  %v1737_v48 = vrot.slane %v1618_v58, 1  ;;  %v1864_v3 = vmul.f32 %v3461_v13, %v2700_v40  ;;  %v2628_v43 = vld [vmem:[%s2928_s6 + $0x88] sm:$0x3] }
  0xa8   : > { %v1567_v41 = vadd.f32 %v1535_v49, %v1446_v0  ;;  %v1980_v10 = vrot.slane %v1862_v60, 2  ;;  %v1981_v59 = vrot.slane %v1863_v6, 2  ;;  %v325_v12 = vmul.f32 %v3473_v30, %v3272_v18 }
  0xa9   : > { %v1568_v5 = vadd.f32 %v1536_v52, %v1447_v61  ;;  %v1736_v15 = vsel %vm451_vm1, %v1734_v54, %v1735_v8  ;;  %v1738_v16 = vsel %vm451_vm1, %v1735_v8, %v1737_v48  ;;  %v1983_v17 = vrot.slane %v1864_v3, 2 }
  0xaa   : > { %v1813_v21 = vadd.f32 %v1736_v15, %v1567_v41  ;;  %v1982_v22 = vsel %vm698_vm2, %v1980_v10, %v1981_v59  ;;  %v326_v24 = vmul.f32 %v3473_v30, %v3275_v19  ;;  %v367_v20 = vmul.f32 %v3376_v1, %v3272_v18 }
  0xab   : > { %v1814_v51 = vadd.f32 %v1738_v16, %v1568_v5  ;;  %v1984_v9 = vsel %vm698_vm2, %v1981_v59, %v1983_v17  ;;  %v368_v26 = vmul.f32 %v3376_v1, %v3275_v19  ;;  %v369_v27 = vmul.f32 %v3376_v1, %v277_v11 }
  0xac   : > { %v2059_v28 = vadd.f32 %v1982_v22, %v1813_v21  ;;  %v472_v62 = vrot.slane %v367_v20, 1  ;;  %v614_v29 = vmul.f32 %v3385_v2, %v3272_v18  ;;  %v615_v31 = vmul.f32 %v3385_v2, %v3275_v19  ;;  %v3586_v22 = vld [vmem:[%s2928_s6 + $0x90] sm:$0xff]  ;;  %v2679_v20 = vld [vmem:[%s2928_s6 + $0xa0] sm:$0x3] }
  0xad   : > { %v2060_v32 = vadd.f32 %v1984_v9, %v1814_v51  ;;  %v473_v33 = vrot.slane %v368_v26, 1  ;;  %v475_v36 = vrot.slane %v369_v27, 1  ;;  %v616_v37 = vmul.f32 %v3385_v2, %v277_v11 }
  0xae   : > { %v2098_v40 = vadd.f32 %v3499_v56, %v2059_v28  ;;  %v719_v42 = vrot.slane %v614_v29, 2  ;;  %v720_v34 = vrot.slane %v615_v31, 2  ;;  %v908_v45 = vmul.f32 %v3398_v14, %v3428_v55 }
  0xaf   : > { %v2099_v49 = vadd.f32 %v3499_v56, %v2060_v32  ;;  %v474_v18 = vsel %vm451_vm1, %v472_v62, %v473_v33  ;;  %v476_v50 = vsel %vm451_vm1, %v473_v33, %v475_v36  ;;  %v722_v19 = vrot.slane %v616_v37, 2 }
  0xb0   : > { %v2130_v38 = vmax.f32 %v2098_v40, 0.0  ;;  %v572_v52 = vadd.f32 %v474_v18, %v325_v12  ;;  %v573_v53 = vadd.f32 %v476_v50, %v326_v24  ;;  %v721_v57 = vsel %vm698_vm2, %v719_v42, %v720_v34  ;;  %v3589_v24 = vld [vmem:[%s2928_s6 + $0x98] sm:$0xff] }
  0xb1   : > { %v2131_v58 = vmax.f32 %v2099_v49, 0.0  ;;  %v723_v60 = vsel %vm698_vm2, %v720_v34, %v722_v19  ;;  %v909_v4 = vmul.f32 %v3398_v14, %v3432_v44  ;;  %v982_v0 = vmul.f32 %v3411_v35, %v3428_v55 }
  0xb2   : > { %v2162_v54 = vmin.f32 %v2130_v38, 6.0  ;;  %v819_v6 = vadd.f32 %v721_v57, %v572_v52  ;;  %v820_v61 = vadd.f32 %v723_v60, %v573_v53  ;;  %v983_v8 = vmul.f32 %v3411_v35, %v3432_v44  ;;  %v301_v57 = vld [vmem:[%s2928_s6 + $0x130] sm:$0x3] }
  0xb3   : > { %v2163_v48 = vmin.f32 %v2131_v58, 6.0  ;;  %v984_v3 = vmul.f32 %v3411_v35, %v2628_v43  ;;  %v1086_v41 = vrot.slane %v982_v0, 1  ;;  %v1228_v10 = vmul.f32 %v3421_v46, %v3428_v55 }
  0xb4   : > { %v940_v59 = vadd.f32 %v908_v45, %v819_v6  ;;  %v941_v11 = vadd.f32 %v909_v4, %v820_v61  ;;  %v1087_v12 = vrot.slane %v983_v8, 1  ;;  %v1229_v5 = vmul.f32 %v3421_v46, %v3432_v44 }
  0xb5   : > { %v2183_v15 = vpack.c.bf16 %v2163_v48, %v2162_v54  ;;  %v1089_v16 = vrot.slane %v984_v3, 1  ;;  %v1230_v17 = vmul.f32 %v3421_v46, %v2628_v43  ;;  %v1332_v21 = vrot.slane %v1228_v10, 2 }
  0xb6   : > { %v1088_v51 = vsel %vm451_vm1, %v1086_v41, %v1087_v12  ;;  %v1333_v9 = vrot.slane %v1229_v5, 2  ;;  %v1521_v26 = vmul.f32 %v3438_v63, %v3586_v22  ;;  %v1522_v27 = vmul.f32 %v3438_v63, %v3589_v24 }
  0xb7   : > { %2777 = vmatmul.mubr.msk.bf16.gmra.mrb[4].mxu1 %vm2196_vm3, %v2183_v15  ;;  %v1090_v28 = vsel %vm451_vm1, %v1087_v12, %v1089_v16  ;;  %v1186_v62 = vadd.f32 %v1088_v51, %v940_v59  ;;  %v1335_v29 = vrot.slane %v1230_v17, 2  ;;  %v1595_v31 = vmul.f32 %v3450_v7, %v3586_v22 }
  0xb8   : > { %v1187_v32 = vadd.f32 %v1090_v28, %v941_v11  ;;  %v1334_v33 = vsel %vm698_vm2, %v1332_v21, %v1333_v9  ;;  %v1596_v36 = vmul.f32 %v3450_v7, %v3589_v24  ;;  %v1597_v37 = vmul.f32 %v3450_v7, %v2679_v20 }
  0xb9   : > { %v1336_v40 = vsel %vm698_vm2, %v1333_v9, %v1335_v29  ;;  %v1432_v42 = vadd.f32 %v1334_v33, %v1186_v62  ;;  %v1699_v34 = vrot.slane %v1595_v31, 1  ;;  %v1841_v45 = vmul.f32 %v3461_v13, %v3586_v22 }
  0xba   : > { %v1433_v49 = vadd.f32 %v1336_v40, %v1187_v32  ;;  %v1700_v18 = vrot.slane %v1596_v36, 1  ;;  %v1702_v50 = vrot.slane %v1597_v37, 1  ;;  %v1842_v19 = vmul.f32 %v3461_v13, %v3589_v24 }
  0xbb   : > { %v1553_v38 = vadd.f32 %v1521_v26, %v1432_v42  ;;  %v1843_v52 = vmul.f32 %v3461_v13, %v2679_v20  ;;  %v1945_v53 = vrot.slane %v1841_v45, 2  ;;  %v341_v43 = vmul.f32 %v3473_v30, %v3338_v23 }
  0xbc   : > { %v1554_v58 = vadd.f32 %v1522_v27, %v1433_v49  ;;  %v1701_v60 = vsel %vm451_vm1, %v1699_v34, %v1700_v18  ;;  %v1703_v4 = vsel %vm451_vm1, %v1700_v18, %v1702_v50  ;;  %v1946_v0 = vrot.slane %v1842_v19, 2 }
  0xbd   : > { %v1799_v54 = vadd.f32 %v1701_v60, %v1553_v38  ;;  %v1948_v6 = vrot.slane %v1843_v52, 2  ;;  %v342_v61 = vmul.f32 %v3473_v30, %v3342_v25  ;;  %v391_v8 = vmul.f32 %v3376_v1, %v3338_v23 }
  0xbe   : > { %v1800_v48 = vadd.f32 %v1703_v4, %v1554_v58  ;;  %v1947_v3 = vsel %vm698_vm2, %v1945_v53, %v1946_v0  ;;  %v392_v41 = vmul.f32 %v3376_v1, %v3342_v25  ;;  %v393_v10 = vmul.f32 %v3376_v1, %v301_v57 }
  0xbf   : > { %v1949_v59 = vsel %vm698_vm2, %v1946_v0, %v1948_v6  ;;  %v2045_v11 = vadd.f32 %v1947_v3, %v1799_v54  ;;  %v512_v12 = vrot.slane %v391_v8, 1  ;;  %v638_v5 = vmul.f32 %v3385_v2, %v3338_v23  ;;  %v3652_v6 = vld [vmem:[%s2928_s6 + $0x150] sm:$0xff]  ;;  %v3656_v3 = vld [vmem:[%s2928_s6 + $0x158] sm:$0xff] }
  0xc0   : > { %v2046_v15 = vadd.f32 %v1949_v59, %v1800_v48  ;;  %v513_v16 = vrot.slane %v392_v41, 1  ;;  %v515_v17 = vrot.slane %v393_v10, 1  ;;  %v639_v21 = vmul.f32 %v3385_v2, %v3342_v25  ;;  %v2652_v25 = vld [vmem:[%s2928_s6 + $0x148] sm:$0x3]  ;;  %v2703_v41 = vld [vmem:[%s2928_s6 + $0x160] sm:$0x3] }
  0xc1   : > { %v2084_v20 = vadd.f32 %v3499_v56, %v2045_v11  ;;  %v640_v51 = vmul.f32 %v3385_v2, %v301_v57  ;;  %v759_v9 = vrot.slane %v638_v5, 2  ;;  %v924_v26 = vmul.f32 %v3398_v14, %v3521_v39 }
  0xc2   : > { %v2085_v27 = vadd.f32 %v3499_v56, %v2046_v15  ;;  %v514_v28 = vsel %vm451_vm1, %v512_v12, %v513_v16  ;;  %v516_v23 = vsel %vm451_vm1, %v513_v16, %v515_v17  ;;  %v760_v62 = vrot.slane %v639_v21, 2 }
  0xc3   : > { %v2116_v29 = vmax.f32 %v2084_v20, 0.0  ;;  %v588_v31 = vadd.f32 %v514_v28, %v341_v43  ;;  %v589_v32 = vadd.f32 %v516_v23, %v342_v61  ;;  %v762_v33 = vrot.slane %v640_v51, 2 }
  0xc4   : > { %v2117_v36 = vmax.f32 %v2085_v27, 0.0  ;;  %v761_v37 = vsel %vm698_vm2, %v759_v9, %v760_v62  ;;  %v925_v40 = vmul.f32 %v3398_v14, %v3526_v47  ;;  %v1006_v42 = vmul.f32 %v3411_v35, %v3521_v39 }
  0xc5   : > { %v2148_v34 = vmin.f32 %v2116_v29, 6.0  ;;  %v763_v45 = vsel %vm698_vm2, %v760_v62, %v762_v33  ;;  %v835_v49 = vadd.f32 %v761_v37, %v588_v31  ;;  %v1007_v18 = vmul.f32 %v3411_v35, %v3526_v47 }
  0xc6   : > { %v2149_v50 = vmin.f32 %v2117_v36, 6.0  ;;  %v836_v19 = vadd.f32 %v763_v45, %v589_v32  ;;  %v1008_v38 = vmul.f32 %v3411_v35, %v2652_v25  ;;  %v1126_v52 = vrot.slane %v1006_v42, 1 }
  0xc7   : > { %v956_v53 = vadd.f32 %v924_v26, %v835_v49  ;;  %v1127_v57 = vrot.slane %v1007_v18, 1  ;;  %v1252_v43 = vmul.f32 %v3421_v46, %v3521_v39  ;;  %v1253_v58 = vmul.f32 %v3421_v46, %v3526_v47 }
  0xc8   : > { %v2176_v60 = vpack.c.bf16 %v2149_v50, %v2148_v34  ;;  %v957_v4 = vadd.f32 %v925_v40, %v836_v19  ;;  %v1129_v0 = vrot.slane %v1008_v38, 1  ;;  %v1254_v54 = vmul.f32 %v3421_v46, %v2652_v25  ;;  %v280_v40 = vld [vmem:[%s2928_s6 + $0x88] sm:$0x3] }
  0xc9   : > { %v1128_v61 = vsel %vm451_vm1, %v1126_v52, %v1127_v57  ;;  %v1372_v8 = vrot.slane %v1252_v43, 2  ;;  %v1373_v48 = vrot.slane %v1253_v58, 2  ;;  %v1537_v10 = vmul.f32 %v3438_v63, %v3652_v6 }
  0xca   : > { %2764 = vmatprep.mubr.msk.bf16.mxu0 %vm2196_vm3, %v2176_v60  ;;  %v1130_v59 = vsel %vm451_vm1, %v1127_v57, %v1129_v0  ;;  %v1202_v11 = vadd.f32 %v1128_v61, %v956_v53  ;;  %v1375_v12 = vrot.slane %v1254_v54, 2  ;;  %v1538_v5 = vmul.f32 %v3438_v63, %v3656_v3 }
  0xcb   : > { %v1203_v15 = vadd.f32 %v1130_v59, %v957_v4  ;;  %v1374_v16 = vsel %vm698_vm2, %v1372_v8, %v1373_v48  ;;  %v1619_v17 = vmul.f32 %v3450_v7, %v3652_v6  ;;  %v1620_v21 = vmul.f32 %v3450_v7, %v3656_v3 }
  0xcc   : > { %v1376_v20 = vsel %vm698_vm2, %v1373_v48, %v1375_v12  ;;  %v1448_v51 = vadd.f32 %v1374_v16, %v1202_v11  ;;  %v1621_v9 = vmul.f32 %v3450_v7, %v2703_v41  ;;  %v1865_v26 = vmul.f32 %v3461_v13, %v3652_v6 }
  0xcd   : > { %v1449_v27 = vadd.f32 %v1376_v20, %v1203_v15  ;;  %v1739_v28 = vrot.slane %v1619_v17, 1  ;;  %v1740_v23 = vrot.slane %v1620_v21, 1  ;;  %v1866_v62 = vmul.f32 %v3461_v13, %v3656_v3 }
  0xce   : > { %v1569_v29 = vadd.f32 %v1537_v10, %v1448_v51  ;;  %v1742_v31 = vrot.slane %v1621_v9, 1  ;;  %v1867_v32 = vmul.f32 %v3461_v13, %v2703_v41  ;;  %v1985_v33 = vrot.slane %v1865_v26, 2 }
  0xcf   : > { %v1570_v25 = vadd.f32 %v1538_v5, %v1449_v27  ;;  %v1741_v36 = vsel %vm451_vm1, %v1739_v28, %v1740_v23  ;;  %v1986_v37 = vrot.slane %v1866_v62, 2  ;;  %v327_v42 = vmul.f32 %v3473_v30, %v3428_v55 }
  0xd0   : > { %v1743_v34 = vsel %vm451_vm1, %v1740_v23, %v1742_v31  ;;  %v1815_v45 = vadd.f32 %v1741_v36, %v1569_v29  ;;  %v1988_v49 = vrot.slane %v1867_v32, 2  ;;  %v328_v18 = vmul.f32 %v3473_v30, %v3432_v44 }
  0xd1   : > { %v1816_v50 = vadd.f32 %v1743_v34, %v1570_v25  ;;  %v1987_v19 = vsel %vm698_vm2, %v1985_v33, %v1986_v37  ;;  %v370_v38 = vmul.f32 %v3376_v1, %v3428_v55  ;;  %v371_v52 = vmul.f32 %v3376_v1, %v3432_v44 }
  0xd2   : > { %v1989_v53 = vsel %vm698_vm2, %v1986_v37, %v1988_v49  ;;  %v2061_v57 = vadd.f32 %v1987_v19, %v1815_v45  ;;  %v372_v43 = vmul.f32 %v3376_v1, %v280_v40  ;;  %v617_v58 = vmul.f32 %v3385_v2, %v3428_v55  ;;  %v3717_v45 = vld [vmem:[%s2928_s6 + $0xa8] sm:$0xff]  ;;  %v3721_v19 = vld [vmem:[%s2928_s6 + $0xb0] sm:$0xff] }
  0xd3   : > { %v2062_v60 = vadd.f32 %v1989_v53, %v1816_v50  ;;  %v477_v4 = vrot.slane %v370_v38, 1  ;;  %v478_v0 = vrot.slane %v371_v52, 1  ;;  %v618_v54 = vmul.f32 %v3385_v2, %v3432_v44  ;;  %v2631_v44 = vld [vmem:[%s2928_s6 + $0xa0] sm:$0x3]  ;;  %v2682_v38 = vld [vmem:[%s2928_s6 + $0xb8] sm:$0x3] }
  0xd4   : > { %v2100_v61 = vadd.f32 %v3499_v56, %v2061_v57  ;;  %v480_v8 = vrot.slane %v372_v43, 1  ;;  %v619_v48 = vmul.f32 %v3385_v2, %v280_v40  ;;  %v724_v41 = vrot.slane %v617_v58, 2 }
  0xd5   : > { %v2101_v10 = vadd.f32 %v3499_v56, %v2062_v60  ;;  %v479_v59 = vsel %vm451_vm1, %v477_v4, %v478_v0  ;;  %v725_v11 = vrot.slane %v618_v54, 2  ;;  %v910_v55 = vmul.f32 %v3398_v14, %v3586_v22 }
  0xd6   : > { %v2132_v12 = vmax.f32 %v2100_v61, 0.0  ;;  %v481_v5 = vsel %vm451_vm1, %v478_v0, %v480_v8  ;;  %v574_v15 = vadd.f32 %v479_v59, %v327_v42  ;;  %v727_v16 = vrot.slane %v619_v48, 2 }
  0xd7   : > { %v2133_v17 = vmax.f32 %v2101_v10, 0.0  ;;  %v575_v21 = vadd.f32 %v481_v5, %v328_v18  ;;  %v726_v20 = vsel %vm698_vm2, %v724_v41, %v725_v11  ;;  %v911_v51 = vmul.f32 %v3398_v14, %v3589_v24 }
  0xd8   : > { %v2164_v9 = vmin.f32 %v2132_v12, 6.0  ;;  %v728_v26 = vsel %vm698_vm2, %v725_v11, %v727_v16  ;;  %v821_v27 = vadd.f32 %v726_v20, %v574_v15  ;;  %v985_v28 = vmul.f32 %v3411_v35, %v3586_v22  ;;  %v304_v20 = vld [vmem:[%s2928_s6 + $0x148] sm:$0x3] }
  0xd9   : > { %v2165_v23 = vmin.f32 %v2133_v17, 6.0  ;;  %v822_v62 = vadd.f32 %v728_v26, %v575_v21  ;;  %v986_v29 = vmul.f32 %v3411_v35, %v3589_v24  ;;  %v987_v31 = vmul.f32 %v3411_v35, %v2631_v44 }
  0xda   : > { %v942_v32 = vadd.f32 %v910_v55, %v821_v27  ;;  %v1091_v33 = vrot.slane %v985_v28, 1  ;;  %v1231_v25 = vmul.f32 %v3421_v46, %v3586_v22  ;;  %v1232_v36 = vmul.f32 %v3421_v46, %v3589_v24 }
  0xdb   : > { %v2184_v37 = vpack.c.bf16 %v2165_v23, %v2164_v9  ;;  %v943_v40 = vadd.f32 %v911_v51, %v822_v62  ;;  %v1092_v42 = vrot.slane %v986_v29, 1  ;;  %v1094_v34 = vrot.slane %v987_v31, 1 }
  0xdc   : > { %v1233_v49 = vmul.f32 %v3421_v46, %v2631_v44  ;;  %v1337_v18 = vrot.slane %v1231_v25, 2  ;;  %v1338_v50 = vrot.slane %v1232_v36, 2  ;;  %v1523_v52 = vmul.f32 %v3438_v63, %v3717_v45 }
  0xdd   : > { %2780 = vmatprep.mubr.msk.bf16.mxu1 %vm2196_vm3, %v2184_v37  ;;  %v1093_v53 = vsel %vm451_vm1, %v1091_v33, %v1092_v42  ;;  %v1095_v57 = vsel %vm451_vm1, %v1092_v42, %v1094_v34  ;;  %v1524_v43 = vmul.f32 %v3438_v63, %v3721_v19  ;;  %v1598_v58 = vmul.f32 %v3450_v7, %v3717_v45 }
  0xde   : > { %v1188_v60 = vadd.f32 %v1093_v53, %v942_v32  ;;  %v1189_v4 = vadd.f32 %v1095_v57, %v943_v40  ;;  %v1339_v0 = vsel %vm698_vm2, %v1337_v18, %v1338_v50  ;;  %v1340_v54 = vrot.slane %v1233_v49, 2 }
  0xdf   : > { %v1599_v61 = vmul.f32 %v3450_v7, %v3721_v19  ;;  %v1600_v8 = vmul.f32 %v3450_v7, %v2682_v38  ;;  %v1704_v48 = vrot.slane %v1598_v58, 1  ;;  %v1844_v41 = vmul.f32 %v3461_v13, %v3717_v45 }
  0xe0   : > { %v1341_v10 = vsel %vm698_vm2, %v1338_v50, %v1340_v54  ;;  %v1434_v59 = vadd.f32 %v1339_v0, %v1188_v60  ;;  %v1845_v11 = vmul.f32 %v3461_v13, %v3721_v19  ;;  %v1846_v55 = vmul.f32 %v3461_v13, %v2682_v38 }
  0xe1   : > { %v1435_v12 = vadd.f32 %v1341_v10, %v1189_v4  ;;  %v1705_v5 = vrot.slane %v1599_v61, 1  ;;  %v1707_v15 = vrot.slane %v1600_v8, 1  ;;  %v1950_v16 = vrot.slane %v1844_v41, 2 }
  0xe2   : > { %v1555_v44 = vadd.f32 %v1523_v52, %v1434_v59  ;;  %v1951_v17 = vrot.slane %v1845_v11, 2  ;;  %v1953_v21 = vrot.slane %v1846_v55, 2  ;;  %v343_v51 = vmul.f32 %v3473_v30, %v3521_v39 }
  0xe3   : > { %v1556_v9 = vadd.f32 %v1524_v43, %v1435_v12  ;;  %v1706_v26 = vsel %vm451_vm1, %v1704_v48, %v1705_v5  ;;  %v1708_v27 = vsel %vm451_vm1, %v1705_v5, %v1707_v15  ;;  %v344_v28 = vmul.f32 %v3473_v30, %v3526_v47 }
  0xe4   : > { %v1801_v23 = vadd.f32 %v1706_v26, %v1555_v44  ;;  %v1952_v62 = vsel %vm698_vm2, %v1950_v16, %v1951_v17  ;;  %v1954_v29 = vsel %vm698_vm2, %v1951_v17, %v1953_v21  ;;  %v394_v31 = vmul.f32 %v3376_v1, %v3521_v39 }
  0xe5   : > { %v1802_v32 = vadd.f32 %v1708_v27, %v1556_v9  ;;  %v395_v33 = vmul.f32 %v3376_v1, %v3526_v47  ;;  %v396_v25 = vmul.f32 %v3376_v1, %v304_v20  ;;  %v641_v36 = vmul.f32 %v3385_v2, %v3521_v39 }
  0xe6   : > { %v2047_v37 = vadd.f32 %v1952_v62, %v1801_v23  ;;  %v517_v40 = vrot.slane %v394_v31, 1  ;;  %v642_v42 = vmul.f32 %v3385_v2, %v3526_v47  ;;  %v643_v34 = vmul.f32 %v3385_v2, %v304_v20  ;;  %v2655_v47 = vld [vmem:[%s2928_s6 + $0x160] sm:$0x3]  ;;  %v3785_v62 = vld [vmem:[%s2928_s6 + $0x168] sm:$0xff] }
  0xe7   : > { %v2048_v49 = vadd.f32 %v1954_v29, %v1802_v32  ;;  %v518_v18 = vrot.slane %v395_v33, 1  ;;  %v520_v50 = vrot.slane %v396_v25, 1  ;;  %v764_v38 = vrot.slane %v641_v36, 2  ;;  %v2706_v29 = vld [vmem:[%s2928_s6 + $0x178] sm:$0x3]  ;;  %v3790_v25 = vld [vmem:[%s2928_s6 + $0x170] sm:$0xff] }
  0xe8   : > { %v2086_v52 = vadd.f32 %v3499_v56, %v2047_v37  ;;  %v765_v53 = vrot.slane %v642_v42, 2  ;;  %v767_v57 = vrot.slane %v643_v34, 2  ;;  %v926_v43 = vmul.f32 %v3398_v14, %v3652_v6 }
  0xe9   : > { %v2087_v39 = vadd.f32 %v3499_v56, %v2048_v49  ;;  %v519_v58 = vsel %vm451_vm1, %v517_v40, %v518_v18  ;;  %v521_v60 = vsel %vm451_vm1, %v518_v18, %v520_v50  ;;  %v927_v4 = vmul.f32 %v3398_v14, %v3656_v3 }
  0xea   : > { %v2118_v0 = vmax.f32 %v2086_v52, 0.0  ;;  %v590_v54 = vadd.f32 %v519_v58, %v343_v51  ;;  %v591_v61 = vadd.f32 %v521_v60, %v344_v28  ;;  %v766_v8 = vsel %vm698_vm2, %v764_v38, %v765_v53 }
  0xeb   : > { %v2119_v48 = vmax.f32 %v2087_v39, 0.0  ;;  %v768_v41 = vsel %vm698_vm2, %v765_v53, %v767_v57  ;;  %v1009_v10 = vmul.f32 %v3411_v35, %v3652_v6  ;;  %v1010_v59 = vmul.f32 %v3411_v35, %v3656_v3 }
  0xec   : > { %v2150_v11 = vmin.f32 %v2118_v0, 6.0  ;;  %v837_v55 = vadd.f32 %v766_v8, %v590_v54  ;;  %v838_v12 = vadd.f32 %v768_v41, %v591_v61  ;;  %v1011_v5 = vmul.f32 %v3411_v35, %v2655_v47  ;;  %v283_v61 = vld [vmem:[%s2928_s6 + $0xa0] sm:$0x3] }
  0xed   : > { %v2151_v15 = vmin.f32 %v2119_v48, 6.0  ;;  %v1131_v16 = vrot.slane %v1009_v10, 1  ;;  %v1132_v44 = vrot.slane %v1010_v59, 1  ;;  %v1255_v17 = vmul.f32 %v3421_v46, %v3652_v6 }
  0xee   : > { %v958_v21 = vadd.f32 %v926_v43, %v837_v55  ;;  %v959_v20 = vadd.f32 %v927_v4, %v838_v12  ;;  %v1134_v51 = vrot.slane %v1011_v5, 1  ;;  %v1256_v9 = vmul.f32 %v3421_v46, %v3656_v3 }
  0xef   : > { %v2177_v26 = vpack.c.bf16 %v2151_v15, %v2150_v11  ;;  %v1133_v27 = vsel %vm451_vm1, %v1131_v16, %v1132_v44  ;;  %v1257_v28 = vmul.f32 %v3421_v46, %v2655_v47  ;;  %v1377_v23 = vrot.slane %v1255_v17, 2 }
  0xf0   : > { %v1135_v31 = vsel %vm451_vm1, %v1132_v44, %v1134_v51  ;;  %v1204_v32 = vadd.f32 %v1133_v27, %v958_v21  ;;  %v1378_v33 = vrot.slane %v1256_v9, 2  ;;  %v1539_v36 = vmul.f32 %v3438_v63, %v3785_v62 }
  0xf1   : > { %2765 = vmatmul.mubr.msk.bf16.gmra.mrb[8].mxu0 %vm2196_vm3, %v2177_v26  ;;  %v1205_v37 = vadd.f32 %v1135_v31, %v959_v20  ;;  %v1380_v40 = vrot.slane %v1257_v28, 2  ;;  %v1540_v42 = vmul.f32 %v3438_v63, %v3790_v25  ;;  %v1622_v34 = vmul.f32 %v3450_v7, %v3785_v62 }
  0xf2   : > { %v1379_v49 = vsel %vm698_vm2, %v1377_v23, %v1378_v33  ;;  %v1623_v18 = vmul.f32 %v3450_v7, %v3790_v25  ;;  %v1624_v50 = vmul.f32 %v3450_v7, %v2706_v29  ;;  %v1868_v38 = vmul.f32 %v3461_v13, %v3785_v62 }
  0xf3   : > { %v1381_v52 = vsel %vm698_vm2, %v1378_v33, %v1380_v40  ;;  %v1450_v53 = vadd.f32 %v1379_v49, %v1204_v32  ;;  %v1744_v57 = vrot.slane %v1622_v34, 1  ;;  %v1869_v43 = vmul.f32 %v3461_v13, %v3790_v25 }
  0xf4   : > { %v1451_v39 = vadd.f32 %v1381_v52, %v1205_v37  ;;  %v1745_v58 = vrot.slane %v1623_v18, 1  ;;  %v1747_v60 = vrot.slane %v1624_v50, 1  ;;  %v1870_v47 = vmul.f32 %v3461_v13, %v2706_v29 }
  0xf5   : > { %v1571_v4 = vadd.f32 %v1539_v36, %v1450_v53  ;;  %v1990_v0 = vrot.slane %v1868_v38, 2  ;;  %v1991_v54 = vrot.slane %v1869_v43, 2  ;;  %v329_v8 = vmul.f32 %v3473_v30, %v3586_v22 }
  0xf6   : > { %v1572_v48 = vadd.f32 %v1540_v42, %v1451_v39  ;;  %v1746_v41 = vsel %vm451_vm1, %v1744_v57, %v1745_v58  ;;  %v1748_v10 = vsel %vm451_vm1, %v1745_v58, %v1747_v60  ;;  %v1993_v59 = vrot.slane %v1870_v47, 2 }
  0xf7   : > { %v1817_v11 = vadd.f32 %v1746_v41, %v1571_v4  ;;  %v1992_v55 = vsel %vm698_vm2, %v1990_v0, %v1991_v54  ;;  %v330_v12 = vmul.f32 %v3473_v30, %v3589_v24  ;;  %v373_v5 = vmul.f32 %v3376_v1, %v3586_v22 }
  0xf8   : > { %v1818_v15 = vadd.f32 %v1748_v10, %v1572_v48  ;;  %v1994_v16 = vsel %vm698_vm2, %v1991_v54, %v1993_v59  ;;  %v374_v44 = vmul.f32 %v3376_v1, %v3589_v24  ;;  %v375_v17 = vmul.f32 %v3376_v1, %v283_v61  ;;  %v3850_v10 = vld [vmem:[%s2928_s6 + $0xc0] sm:$0xff]  ;;  %v3853_v59 = vld [vmem:[%s2928_s6 + $0xc8] sm:$0xff] }
  0xf9   : > { %v2063_v21 = vadd.f32 %v1992_v55, %v1817_v11  ;;  %v482_v20 = vrot.slane %v373_v5, 1  ;;  %v620_v51 = vmul.f32 %v3385_v2, %v3586_v22  ;;  %v621_v9 = vmul.f32 %v3385_v2, %v3589_v24 }
  0xfa   : > { %v2064_v26 = vadd.f32 %v1994_v16, %v1818_v15  ;;  %v483_v27 = vrot.slane %v374_v44, 1  ;;  %v485_v28 = vrot.slane %v375_v17, 1  ;;  %v622_v23 = vmul.f32 %v3385_v2, %v283_v61  ;;  %v2634_v2 = vld [vmem:[%s2928_s6 + $0xb8] sm:$0x3] }
  0xfb   : > { %v2102_v29 = vadd.f32 %v3499_v56, %v2063_v21  ;;  %v729_v31 = vrot.slane %v620_v51, 2  ;;  %v730_v32 = vrot.slane %v621_v9, 2  ;;  %v912_v1 = vmul.f32 %v3398_v14, %v3717_v45 }
  0xfc   : > { %v2103_v33 = vadd.f32 %v3499_v56, %v2064_v26  ;;  %v484_v22 = vsel %vm451_vm1, %v482_v20, %v483_v27  ;;  %v486_v36 = vsel %vm451_vm1, %v483_v27, %v485_v28  ;;  %v732_v24 = vrot.slane %v622_v23, 2 }
  0xfd   : > { %v2134_v37 = vmax.f32 %v2102_v29, 0.0  ;;  %v576_v40 = vadd.f32 %v484_v22, %v329_v8  ;;  %v577_v42 = vadd.f32 %v486_v36, %v330_v12  ;;  %v731_v34 = vsel %vm698_vm2, %v729_v31, %v730_v32  ;;  %v307_v22 = vld [vmem:[%s2928_s6 + $0x160] sm:$0x3] }
  0xfe   : > { %v2135_v49 = vmax.f32 %v2103_v33, 0.0  ;;  %v733_v18 = vsel %vm698_vm2, %v730_v32, %v732_v24  ;;  %v913_v50 = vmul.f32 %v3398_v14, %v3721_v19  ;;  %v988_v38 = vmul.f32 %v3411_v35, %v3717_v45 }
  0xff   : > { %v2166_v52 = vmin.f32 %v2134_v37, 6.0  ;;  %v823_v53 = vadd.f32 %v731_v34, %v576_v40  ;;  %v824_v57 = vadd.f32 %v733_v18, %v577_v42  ;;  %v989_v43 = vmul.f32 %v3411_v35, %v3721_v19 }
 0x100   : > { %v2167_v39 = vmin.f32 %v2135_v49, 6.0  ;;  %v990_v58 = vmul.f32 %v3411_v35, %v2634_v2  ;;  %v1096_v60 = vrot.slane %v988_v38, 1  ;;  %v1234_v47 = vmul.f32 %v3421_v46, %v3717_v45  ;;  %v2685_v35 = vld [vmem:[%s2928_s6 + $0xd0] sm:$0x3] }
 0x101   : > { %v944_v14 = vadd.f32 %v912_v1, %v823_v53  ;;  %v945_v4 = vadd.f32 %v913_v50, %v824_v57  ;;  %v1097_v0 = vrot.slane %v989_v43, 1  ;;  %v1235_v54 = vmul.f32 %v3421_v46, %v3721_v19  ;;  %v3897_v43 = vld [vmem:[%s4239_s1 + $0x2] ss:$0 sm:$0xff] }
 0x102   : > { %v2185_v61 = vpack.c.bf16 %v2167_v39, %v2166_v52  ;;  %v1099_v8 = vrot.slane %v990_v58, 1  ;;  %v1236_v48 = vmul.f32 %v3421_v46, %v2634_v2  ;;  %v1342_v41 = vrot.slane %v1234_v47, 2 }
 0x103   : > { %v1098_v11 = vsel %vm451_vm1, %v1096_v60, %v1097_v0  ;;  %v1343_v55 = vrot.slane %v1235_v54, 2  ;;  %v1525_v12 = vmul.f32 %v3438_v63, %v3850_v10  ;;  %v1526_v5 = vmul.f32 %v3438_v63, %v3853_v59 }
 0x104   : > { %2781 = vmatmul.mubr.msk.bf16.gmra.mrb[8].mxu1 %vm2196_vm3, %v2185_v61  ;;  %v1100_v15 = vsel %vm451_vm1, %v1097_v0, %v1099_v8  ;;  %v1190_v46 = vadd.f32 %v1098_v11, %v944_v14  ;;  %v1345_v16 = vrot.slane %v1236_v48, 2  ;;  %v1601_v44 = vmul.f32 %v3450_v7, %v3850_v10  ;;  %v3908_v61 = vld [vmem:[%s4239_s1 + $0x3] ss:$0 sm:$0xff] }
 0x105   : > { %v1191_v17 = vadd.f32 %v1100_v15, %v945_v4  ;;  %v1344_v21 = vsel %vm698_vm2, %v1342_v41, %v1343_v55  ;;  %v1602_v20 = vmul.f32 %v3450_v7, %v3853_v59  ;;  %v1603_v51 = vmul.f32 %v3450_v7, %v2685_v35 }
 0x106   : > { %v1346_v63 = vsel %vm698_vm2, %v1343_v55, %v1345_v16  ;;  %v1436_v9 = vadd.f32 %v1344_v21, %v1190_v46  ;;  %v1709_v26 = vrot.slane %v1601_v44, 1  ;;  %v1847_v27 = vmul.f32 %v3461_v13, %v3850_v10 }
 0x107   : > { %v1437_v28 = vadd.f32 %v1346_v63, %v1191_v17  ;;  %v1710_v23 = vrot.slane %v1602_v20, 1  ;;  %v1712_v29 = vrot.slane %v1603_v51, 1  ;;  %v1848_v31 = vmul.f32 %v3461_v13, %v3853_v59 }
 0x108   : > { %v1557_v32 = vadd.f32 %v1525_v12, %v1436_v9  ;;  %v1849_v1 = vmul.f32 %v3461_v13, %v2685_v35  ;;  %v1955_v33 = vrot.slane %v1847_v27, 2  ;;  %v345_v7 = vmul.f32 %v3473_v30, %v3652_v6  ;;  %v3885_v13 = vld [vmem:[%s4239_s1 + $0x1] ss:$0 sm:$0xff] }
 0x109   : > { %v1558_v36 = vadd.f32 %v1526_v5, %v1437_v28  ;;  %v1711_v24 = vsel %vm451_vm1, %v1709_v26, %v1710_v23  ;;  %v1713_v37 = vsel %vm451_vm1, %v1710_v23, %v1712_v29  ;;  %v1956_v40 = vrot.slane %v1848_v31, 2  ;;  %v2658_v5 = vld [vmem:[%s2928_s6 + $0x178] sm:$0x3]  ;;  %v3933_v29 = vld [vmem:[%s4239_s1 + $0x5] ss:$0 sm:$0xff] }
 0x10a   : > { %v1803_v42 = vadd.f32 %v1711_v24, %v1557_v32  ;;  %v1958_v34 = vrot.slane %v1849_v1, 2  ;;  %v346_v2 = vmul.f32 %v3473_v30, %v3656_v3  ;;  %v397_v49 = vmul.f32 %v3885_v13, %v3652_v6 }
 0x10b   : > { %v1804_v18 = vadd.f32 %v1713_v37, %v1558_v36  ;;  %v1957_v50 = vsel %vm698_vm2, %v1955_v33, %v1956_v40  ;;  %v398_v38 = vmul.f32 %v3885_v13, %v3656_v3  ;;  %v399_v52 = vmul.f32 %v3885_v13, %v307_v22  ;;  %v3941_v36 = vld [vmem:[%s2928_s6 + $0x180] sm:$0xff] }
 0x10c   : > { %v1959_v53 = vsel %vm698_vm2, %v1956_v40, %v1958_v34  ;;  %v2049_v57 = vadd.f32 %v1957_v50, %v1803_v42  ;;  %v522_v30 = vrot.slane %v397_v49, 1  ;;  %v644_v39 = vmul.f32 %v3897_v43, %v3652_v6  ;;  %v3945_v42 = vld [vmem:[%s2928_s6 + $0x188] sm:$0xff]  ;;  %v2709_v34 = vld [vmem:[%s2928_s6 + $0x190] sm:$0x3] }
 0x10d   : > { %v2050_v58 = vadd.f32 %v1959_v53, %v1804_v18  ;;  %v523_v60 = vrot.slane %v398_v38, 1  ;;  %v525_v47 = vrot.slane %v399_v52, 1  ;;  %v645_v14 = vmul.f32 %v3897_v43, %v3656_v3 }
 0x10e   : > { %v2088_v4 = vadd.f32 %v3499_v56, %v2049_v57  ;;  %v646_v0 = vmul.f32 %v3897_v43, %v307_v22  ;;  %v769_v54 = vrot.slane %v644_v39, 2  ;;  %v928_v6 = vmul.f32 %v3908_v61, %v3785_v62 }
 0x10f   : > { %v2089_v8 = vadd.f32 %v3499_v56, %v2050_v58  ;;  %v524_v48 = vsel %vm451_vm1, %v522_v30, %v523_v60  ;;  %v526_v41 = vsel %vm451_vm1, %v523_v60, %v525_v47  ;;  %v770_v3 = vrot.slane %v645_v14, 2  ;;  %v3922_v56 = vld [vmem:[%s4239_s1 + $0x4] ss:$0 sm:$0xff]  ;;  %v3963_v30 = vld [vmem:[%s4239_s1 + $0x7] ss:$0 sm:$0xff] }
 0x110   : > { %v2120_v35 = vmax.f32 %v2088_v4, 0.0  ;;  %v592_v11 = vadd.f32 %v524_v48, %v345_v7  ;;  %v593_v55 = vadd.f32 %v526_v41, %v346_v2  ;;  %v772_v12 = vrot.slane %v646_v0, 2  ;;  %v3951_v2 = vld [vmem:[%s4239_s1 + $0x6] ss:$0 sm:$0xff]  ;;  %v3974_v4 = vld [vmem:[%s4239_s1 + $0x8] ss:$0 sm:$0xff] }
 0x111   : > { %v2121_v15 = vmax.f32 %v2089_v8, 0.0  ;;  %v771_v46 = vsel %vm698_vm2, %v769_v54, %v770_v3  ;;  %v929_v16 = vmul.f32 %v3908_v61, %v3790_v25  ;;  %v1012_v44 = vmul.f32 %v3922_v56, %v3785_v62 }
 0x112   : > { %v2152_v17 = vmin.f32 %v2120_v35, 6.0  ;;  %v773_v21 = vsel %vm698_vm2, %v770_v3, %v772_v12  ;;  %v839_v20 = vadd.f32 %v771_v46, %v592_v11  ;;  %v1013_v51 = vmul.f32 %v3922_v56, %v3790_v25  ;;  %v3986_v46 = vld [vmem:[%s4239_s1] ss:$0 sm:$0xff] }
 0x113   : > { %v2153_v63 = vmin.f32 %v2121_v15, 6.0  ;;  %v840_v9 = vadd.f32 %v773_v21, %v593_v55  ;;  %v1014_v26 = vmul.f32 %v3922_v56, %v2658_v5  ;;  %v1136_v27 = vrot.slane %v1012_v44, 1  ;;  %v286_v15 = vld [vmem:[%s2928_s6 + $0xb8] sm:$0x3] }
 0x114   : > { %v960_v28 = vadd.f32 %v928_v6, %v839_v20  ;;  %v1137_v23 = vrot.slane %v1013_v51, 1  ;;  %v1258_v31 = vmul.f32 %v3933_v29, %v3785_v62  ;;  %v1259_v32 = vmul.f32 %v3933_v29, %v3790_v25 }
 0x115   : > { %v2178_v1 = vpack.c.bf16 %v2153_v63, %v2152_v17  ;;  %v961_v33 = vadd.f32 %v929_v16, %v840_v9  ;;  %v1139_v22 = vrot.slane %v1014_v26, 1  ;;  %v1260_v7 = vmul.f32 %v3933_v29, %v2658_v5 }
 0x116   : > { %v1138_v24 = vsel %vm451_vm1, %v1136_v27, %v1137_v23  ;;  %v1382_v37 = vrot.slane %v1258_v31, 2  ;;  %v1383_v40 = vrot.slane %v1259_v32, 2  ;;  %v1541_v49 = vmul.f32 %v3951_v2, %v3941_v36 }
 0x117   : > { %2768 = vmatprep.mubr.msk.bf16.mxu0 %vm2196_vm3, %v2178_v1  ;;  %v1140_v18 = vsel %vm451_vm1, %v1137_v23, %v1139_v22  ;;  %v1206_v50 = vadd.f32 %v1138_v24, %v960_v28  ;;  %v1385_v38 = vrot.slane %v1260_v7, 2  ;;  %v1542_v52 = vmul.f32 %v3951_v2, %v3945_v42  ;;  %v4007_v7 = vld [vmem:[%s4241_s3] ss:$0 sm:$0xff] }
 0x118   : > { %v1207_v53 = vadd.f32 %v1140_v18, %v961_v33  ;;  %v1384_v57 = vsel %vm698_vm2, %v1382_v37, %v1383_v40  ;;  %v1625_v39 = vmul.f32 %v3963_v30, %v3941_v36  ;;  %v1626_v58 = vmul.f32 %v3963_v30, %v3945_v42 }
 0x119   : > { %v1386_v60 = vsel %vm698_vm2, %v1383_v40, %v1385_v38  ;;  %v1452_v47 = vadd.f32 %v1384_v57, %v1206_v50  ;;  %v1627_v14 = vmul.f32 %v3963_v30, %v2709_v34  ;;  %v1871_v0 = vmul.f32 %v3974_v4, %v3941_v36  ;;  %v2637_v57 = vld [vmem:[%s2928_s6 + $0xd0] sm:$0x3] }
 0x11a   : > { %v1453_v54 = vadd.f32 %v1386_v60, %v1207_v53  ;;  %v1749_v6 = vrot.slane %v1625_v39, 1  ;;  %v1750_v8 = vrot.slane %v1626_v58, 1  ;;  %v1872_v48 = vmul.f32 %v3974_v4, %v3945_v42 }
 0x11b   : > { %v1573_v41 = vadd.f32 %v1541_v49, %v1452_v47  ;;  %v1752_v3 = vrot.slane %v1627_v14, 1  ;;  %v1873_v35 = vmul.f32 %v3974_v4, %v2709_v34  ;;  %v1995_v11 = vrot.slane %v1871_v0, 2 }
 0x11c   : > { %v1574_v55 = vadd.f32 %v1542_v52, %v1453_v54  ;;  %v1751_v12 = vsel %vm451_vm1, %v1749_v6, %v1750_v8  ;;  %v1996_v5 = vrot.slane %v1872_v48, 2  ;;  %v331_v16 = vmul.f32 %v3986_v46, %v3717_v45 }
 0x11d   : > { %v1753_v44 = vsel %vm451_vm1, %v1750_v8, %v1752_v3  ;;  %v1819_v17 = vadd.f32 %v1751_v12, %v1573_v41  ;;  %v1998_v21 = vrot.slane %v1873_v35, 2  ;;  %v332_v20 = vmul.f32 %v3986_v46, %v3721_v19  ;;  %v2686_v35 = vld [vmem:[%s2928_s6 + $0xd8] sm:$0xff] }
 0x11e   : > { %v1820_v51 = vadd.f32 %v1753_v44, %v1574_v55  ;;  %v1997_v63 = vsel %vm698_vm2, %v1995_v11, %v1996_v5  ;;  %v376_v9 = vmul.f32 %v3885_v13, %v3717_v45  ;;  %v377_v26 = vmul.f32 %v3885_v13, %v3721_v19 }
 0x11f   : > { %v1999_v27 = vsel %vm698_vm2, %v1996_v5, %v1998_v21  ;;  %v2065_v28 = vadd.f32 %v1997_v63, %v1819_v17  ;;  %v378_v23 = vmul.f32 %v3885_v13, %v286_v15  ;;  %v623_v31 = vmul.f32 %v3897_v43, %v3717_v45 }
 0x120   : > { %v2066_v32 = vadd.f32 %v1999_v27, %v1820_v51  ;;  %v487_v1 = vrot.slane %v376_v9, 1  ;;  %v488_v33 = vrot.slane %v377_v26, 1  ;;  %v624_v22 = vmul.f32 %v3897_v43, %v3721_v19  ;;  %v2688_v9 = vld [vmem:[%s2928_s6 + $0xe8] sm:$0x3] }
 0x121   : > { %v2104_v24 = vadd.f32 %v4007_v7, %v2065_v28  ;;  %v490_v37 = vrot.slane %v378_v23, 1  ;;  %v625_v40 = vmul.f32 %v3897_v43, %v286_v15  ;;  %v734_v34 = vrot.slane %v623_v31, 2  ;;  %v2687_v15 = vld [vmem:[%s2928_s6 + $0xe0] sm:$0xff] }
 0x122   : > { %v2105_v45 = vadd.f32 %v4007_v7, %v2066_v32  ;;  %v489_v49 = vsel %vm451_vm1, %v487_v1, %v488_v33  ;;  %v735_v18 = vrot.slane %v624_v22, 2  ;;  %v914_v50 = vmul.f32 %v3908_v61, %v3850_v10 }
 0x123   : > { %v2136_v19 = vmax.f32 %v2104_v24, 0.0  ;;  %v491_v38 = vsel %vm451_vm1, %v488_v33, %v490_v37  ;;  %v578_v52 = vadd.f32 %v489_v49, %v331_v16  ;;  %v737_v53 = vrot.slane %v625_v40, 2 }
 0x124   : > { %v2137_v39 = vmax.f32 %v2105_v45, 0.0  ;;  %v579_v58 = vadd.f32 %v491_v38, %v332_v20  ;;  %v736_v60 = vsel %vm698_vm2, %v734_v34, %v735_v18  ;;  %v915_v47 = vmul.f32 %v3908_v61, %v3853_v59 }
 0x125   : > { %v2168_v14 = vmin.f32 %v2136_v19, 6.0  ;;  %v738_v0 = vsel %vm698_vm2, %v735_v18, %v737_v53  ;;  %v825_v54 = vadd.f32 %v736_v60, %v578_v52  ;;  %v991_v6 = vmul.f32 %v3922_v56, %v3850_v10 }
 0x126   : > { %v2169_v8 = vmin.f32 %v2137_v39, 6.0  ;;  %v826_v48 = vadd.f32 %v738_v0, %v579_v58  ;;  %v992_v41 = vmul.f32 %v3922_v56, %v3853_v59  ;;  %v993_v3 = vmul.f32 %v3922_v56, %v2637_v57 }
 0x127   : > { %v946_v11 = vadd.f32 %v914_v50, %v825_v54  ;;  %v1101_v55 = vrot.slane %v991_v6, 1  ;;  %v1237_v12 = vmul.f32 %v3933_v29, %v3850_v10  ;;  %v1238_v5 = vmul.f32 %v3933_v29, %v3853_v59 }
 0x128   : > { %v2186_v16 = vpack.c.bf16 %v2169_v8, %v2168_v14  ;;  %v947_v44 = vadd.f32 %v915_v47, %v826_v48  ;;  %v1102_v17 = vrot.slane %v992_v41, 1  ;;  %v1104_v21 = vrot.slane %v993_v3, 1  ;;  %v310_v14 = vld [vmem:[%s2928_s6 + $0x178] sm:$0x3] }
 0x129   : > { %v1239_v20 = vmul.f32 %v3933_v29, %v2637_v57  ;;  %v1347_v51 = vrot.slane %v1237_v12, 2  ;;  %v1348_v63 = vrot.slane %v1238_v5, 2  ;;  %v1527_v26 = vmul.f32 %v3951_v2, %v2686_v35 }
 0x12a   : > { %2784 = vmatprep.mubr.msk.bf16.mxu1 %vm2196_vm3, %v2186_v16  ;;  %v1103_v27 = vsel %vm451_vm1, %v1101_v55, %v1102_v17  ;;  %v1105_v10 = vsel %vm451_vm1, %v1102_v17, %v1104_v21  ;;  %v1528_v59 = vmul.f32 %v3951_v2, %v2687_v15  ;;  %v1604_v28 = vmul.f32 %v3963_v30, %v2686_v35  ;;  %v4040_v23 = vpop.f32.mrb[0].mxu0 }
 0x12b   : > { %v1192_v31 = vadd.f32 %v1103_v27, %v946_v11  ;;  %v1193_v32 = vadd.f32 %v1105_v10, %v947_v44  ;;  %v1349_v1 = vsel %vm698_vm2, %v1347_v51, %v1348_v63  ;;  %v1350_v33 = vrot.slane %v1239_v20, 2  ;;  %v4043_v22 = vpop.f32.mrb[1].mxu0 }
 0x12c   : > { %v1605_v24 = vmul.f32 %v3963_v30, %v2687_v15  ;;  %v1606_v37 = vmul.f32 %v3963_v30, %v2688_v9  ;;  %v1714_v40 = vrot.slane %v1604_v28, 1  ;;  %v1850_v34 = vmul.f32 %v3974_v4, %v2686_v35  ;;  %v4048_v45 = vpop.f32.mrb[2].mxu0 }
 0x12d   : > { %v1351_v49 = vsel %vm698_vm2, %v1348_v63, %v1350_v33  ;;  %v1438_v18 = vadd.f32 %v1349_v1, %v1192_v31  ;;  %v1851_v50 = vmul.f32 %v3974_v4, %v2687_v15  ;;  %v1852_v19 = vmul.f32 %v3974_v4, %v2688_v9  ;;  %v4053_v38 = vpop.f32.mrb[3].mxu0 }
 0x12e   : > { %v1439_v52 = vadd.f32 %v1351_v49, %v1193_v32  ;;  %v1715_v53 = vrot.slane %v1605_v24, 1  ;;  %v1717_v57 = vrot.slane %v1606_v37, 1  ;;  %v1960_v39 = vrot.slane %v1850_v34, 2 }
 0x12f   : > { %v1559_v58 = vadd.f32 %v1527_v26, %v1438_v18  ;;  %v1961_v60 = vrot.slane %v1851_v50, 2  ;;  %v1963_v47 = vrot.slane %v1852_v19, 2  ;;  %v347_v0 = vmul.f32 %v3986_v46, %v3785_v62 }
 0x130   : > { %v1560_v54 = vadd.f32 %v1528_v59, %v1439_v52  ;;  %v1716_v6 = vsel %vm451_vm1, %v1714_v40, %v1715_v53  ;;  %v1718_v8 = vsel %vm451_vm1, %v1715_v53, %v1717_v57  ;;  %v348_v48 = vmul.f32 %v3986_v46, %v3790_v25  ;;  %v2710_v57 = vld [vmem:[%s2928_s6 + $0x198] sm:$0xff] }
 0x131   : > { %v1805_v41 = vadd.f32 %v1716_v6, %v1559_v58  ;;  %v1962_v3 = vsel %vm698_vm2, %v1960_v39, %v1961_v60  ;;  %v1964_v35 = vsel %vm698_vm2, %v1961_v60, %v1963_v47  ;;  %v400_v11 = vmul.f32 %v3885_v13, %v3785_v62 }
 0x132   : > { %v1806_v55 = vadd.f32 %v1718_v8, %v1560_v54  ;;  %v401_v12 = vmul.f32 %v3885_v13, %v3790_v25  ;;  %v402_v5 = vmul.f32 %v3885_v13, %v310_v14  ;;  %v647_v15 = vmul.f32 %v3897_v43, %v3785_v62  ;;  %v2712_v8 = vld [vmem:[%s2928_s6 + $0x1a8] sm:$0x3] }
 0x133   : > { %v2051_v16 = vadd.f32 %v1962_v3, %v1805_v41  ;;  %v527_v46 = vrot.slane %v400_v11, 1  ;;  %v648_v44 = vmul.f32 %v3897_v43, %v3790_v25  ;;  %v649_v17 = vmul.f32 %v3897_v43, %v310_v14  ;;  %v2661_v25 = vld [vmem:[%s2928_s6 + $0x190] sm:$0x3]  ;;  %v2711_v14 = vld [vmem:[%s2928_s6 + $0x1a0] sm:$0xff] }
 0x134   : > { %v2052_v21 = vadd.f32 %v1964_v35, %v1806_v55  ;;  %v528_v20 = vrot.slane %v401_v12, 1  ;;  %v530_v51 = vrot.slane %v402_v5, 1  ;;  %v774_v63 = vrot.slane %v647_v15, 2 }
 0x135   : > { %v2090_v9 = vadd.f32 %v4007_v7, %v2051_v16  ;;  %v775_v26 = vrot.slane %v648_v44, 2  ;;  %v777_v27 = vrot.slane %v649_v17, 2  ;;  %v930_v13 = vmul.f32 %v3908_v61, %v3941_v36  ;;  %v4111_v44 = vld [vmem:[%s4242_s4] ss:$0 sm:$0xff] }
 0x136   : > { %v2091_v62 = vadd.f32 %v4007_v7, %v2052_v21  ;;  %v529_v10 = vsel %vm451_vm1, %v527_v46, %v528_v20  ;;  %v531_v59 = vsel %vm451_vm1, %v528_v20, %v530_v51  ;;  %v931_v43 = vmul.f32 %v3908_v61, %v3945_v42 }
 0x137   : > { %v2122_v28 = vmax.f32 %v2090_v9, 0.0  ;;  %v594_v31 = vadd.f32 %v529_v10, %v347_v0  ;;  %v595_v32 = vadd.f32 %v531_v59, %v348_v48  ;;  %v776_v1 = vsel %vm698_vm2, %v774_v63, %v775_v26 }
 0x138   : > { %v2123_v33 = vmax.f32 %v2091_v62, 0.0  ;;  %v778_v24 = vsel %vm698_vm2, %v775_v26, %v777_v27  ;;  %v1015_v37 = vmul.f32 %v3922_v56, %v3941_v36  ;;  %v1016_v40 = vmul.f32 %v3922_v56, %v3945_v42 }
 0x139   : > { %v2154_v34 = vmin.f32 %v2122_v28, 6.0  ;;  %v841_v49 = vadd.f32 %v776_v1, %v594_v31  ;;  %v842_v18 = vadd.f32 %v778_v24, %v595_v32  ;;  %v1017_v61 = vmul.f32 %v3922_v56, %v2661_v25 }
 0x13a   : > { %v2155_v50 = vmin.f32 %v2123_v33, 6.0  ;;  %v1141_v19 = vrot.slane %v1015_v37, 1  ;;  %v1142_v52 = vrot.slane %v1016_v40, 1  ;;  %v1261_v53 = vmul.f32 %v3933_v29, %v3941_v36 }
 0x13b   : > { %v962_v39 = vadd.f32 %v930_v13, %v841_v49  ;;  %v963_v58 = vadd.f32 %v931_v43, %v842_v18  ;;  %v1144_v60 = vrot.slane %v1017_v61, 1  ;;  %v1262_v47 = vmul.f32 %v3933_v29, %v3945_v42 }
 0x13c   : > { %v2179_v0 = vpack.c.bf16 %v2155_v50, %v2154_v34  ;;  %v1143_v54 = vsel %vm451_vm1, %v1141_v19, %v1142_v52  ;;  %v1263_v6 = vmul.f32 %v3933_v29, %v2661_v25  ;;  %v1387_v56 = vrot.slane %v1261_v53, 2 }
 0x13d   : > { %v1145_v48 = vsel %vm451_vm1, %v1142_v52, %v1144_v60  ;;  %v1208_v41 = vadd.f32 %v1143_v54, %v962_v39  ;;  %v1388_v3 = vrot.slane %v1262_v47, 2  ;;  %v1543_v36 = vmul.f32 %v3951_v2, %v2710_v57  ;;  %v2774_v35 = vpop.f32.mrb[0].mxu1 }
 0x13e   : > { %2769 = vmatmul.mubr.msk.bf16.gmra.mrb[12].mxu0 %vm2196_vm3, %v2179_v0  ;;  %v1209_v11 = vadd.f32 %v1145_v48, %v963_v58  ;;  %v1390_v55 = vrot.slane %v1263_v6, 2  ;;  %v1544_v42 = vmul.f32 %v3951_v2, %v2711_v14  ;;  %v1628_v12 = vmul.f32 %v3963_v30, %v2710_v57  ;;  %v2347_v5 = vpop.f32.mrb[1].mxu1 }
 0x13f   : > { %v1389_v29 = vsel %vm698_vm2, %v1387_v56, %v1388_v3  ;;  %v1629_v15 = vmul.f32 %v3963_v30, %v2711_v14  ;;  %v1630_v16 = vmul.f32 %v3963_v30, %v2712_v8  ;;  %v1874_v46 = vmul.f32 %v3974_v4, %v2710_v57  ;;  %v2775_v17 = vpop.f32.mrb[2].mxu1 }
 0x140   : > { %v1391_v2 = vsel %vm698_vm2, %v1388_v3, %v1390_v55  ;;  %v1454_v21 = vadd.f32 %v1389_v29, %v1208_v41  ;;  %v1754_v20 = vrot.slane %v1628_v12, 1  ;;  %v1875_v51 = vmul.f32 %v3974_v4, %v2711_v14  ;;  %v2350_v63 = vpop.f32.mrb[3].mxu1 }
 0x141   : > { %v1455_v9 = vadd.f32 %v1391_v2, %v1209_v11  ;;  %v1755_v26 = vrot.slane %v1629_v15, 1  ;;  %v1757_v27 = vrot.slane %v1630_v16, 1  ;;  %v1876_v30 = vmul.f32 %v3974_v4, %v2712_v8 }
 0x142   : > { %v1575_v13 = vadd.f32 %v1543_v36, %v1454_v21  ;;  %v2000_v62 = vrot.slane %v1874_v46, 2  ;;  %v2001_v10 = vrot.slane %v1875_v51, 2  ;;  %v2292_v59 = vadd.f32 %v4040_v23, %v4111_v44 }
 0x143   : > { %v1576_v25 = vadd.f32 %v1544_v42, %v1455_v9  ;;  %v1756_v43 = vsel %vm451_vm1, %v1754_v20, %v1755_v26  ;;  %v1758_v28 = vsel %vm451_vm1, %v1755_v26, %v1757_v27  ;;  %v2003_v31 = vrot.slane %v1876_v30, 2 }
 0x144   : > { %v1821_v32 = vadd.f32 %v1756_v43, %v1575_v13  ;;  %v2002_v1 = vsel %vm698_vm2, %v2000_v62, %v2001_v10  ;;  %v2412_v33 = vmax.f32 %v2292_v59, 0.0  ;;  %v2356_v24 = vadd.f32 %v2774_v35, %v4111_v44 }
 0x145   : > { %v1822_v4 = vadd.f32 %v1758_v28, %v1576_v25  ;;  %v2004_v37 = vsel %vm698_vm2, %v2001_v10, %v2003_v31  ;;  %v2284_v23 = vadd.f32 %v4111_v44, %v4043_v22  ;;  %v2348_v40 = vadd.f32 %v4111_v44, %v2347_v5 }
 0x146   : > { %v2067_v34 = vadd.f32 %v2002_v1, %v1821_v32  ;;  %v2444_v49 = vmin.f32 %v2412_v33, 6.0  ;;  %v2428_v18 = vmax.f32 %v2356_v24, 0.0  ;;  %v2295_v61 = vadd.f32 %v4048_v45, %v4111_v44 }
 0x147   : > { %v2068_v50 = vadd.f32 %v2004_v37, %v1822_v4  ;;  %v2410_v19 = vmax.f32 %v2284_v23, 0.0  ;;  %v2426_v52 = vmax.f32 %v2348_v40, 0.0  ;;  %v2359_v53 = vadd.f32 %v2775_v17, %v4111_v44 }
 0x148   : > { %v2106_v57 = vadd.f32 %v4007_v7, %v2067_v34  ;;  %2476 = vst.msk [vmem:[%s4127_s30 + $0x10] sm:$0xff] %vm2196_vm3, %v2444_v49  ;;  %v2460_v22 = vmin.f32 %v2428_v18, 6.0  ;;  %v2413_v39 = vmax.f32 %v2295_v61, 0.0  ;;  %v2287_v58 = vadd.f32 %v4111_v44, %v4053_v38 }
 0x149   : > { %v2107_v60 = vadd.f32 %v4007_v7, %v2068_v50  ;;  %v2442_v45 = vmin.f32 %v2410_v19, 6.0  ;;  %v2458_v47 = vmin.f32 %v2426_v52, 6.0  ;;  %v2429_v14 = vmax.f32 %v2359_v53, 0.0 }
 0x14a   : > { %v2138_v0 = vmax.f32 %v2106_v57, 0.0  ;;  %2492 = vst.msk [vmem:[%s4127_s30 + $0x90] sm:$0xff] %vm2196_vm3, %v2460_v22  ;;  %v2445_v54 = vmin.f32 %v2413_v39, 6.0  ;;  %v2411_v6 = vmax.f32 %v2287_v58, 0.0  ;;  %v2351_v56 = vadd.f32 %v4111_v44, %v2350_v63 }
 0x14b   : > { %v2139_v8 = vmax.f32 %v2107_v60, 0.0  ;;  %2474 = vst.msk [vmem:[%s4127_s30] sm:$0xff] %vm2196_vm3, %v2442_v45  ;;  %2490 = vst.msk [vmem:[%s4127_s30 + $0x80] sm:$0xff] %vm2196_vm3, %v2458_v47  ;;  %v2461_v38 = vmin.f32 %v2429_v14, 6.0 }
 0x14c   : > { %v2170_v7 = vmin.f32 %v2138_v0, 6.0  ;;  %2477 = vst.msk [vmem:[%s4127_s30 + $0x18] sm:$0xff] %vm2196_vm3, %v2445_v54  ;;  %v2443_v48 = vmin.f32 %v2411_v6, 6.0  ;;  %v2427_v41 = vmax.f32 %v2351_v56, 0.0 }
 0x14d   : > { %v2171_v3 = vmin.f32 %v2139_v8, 6.0  ;;  %2493 = vst.msk [vmem:[%s4127_s30 + $0x98] sm:$0xff] %vm2196_vm3, %v2461_v38 }
 0x14e   : > { %2475 = vst.msk [vmem:[%s4127_s30 + $0x8] sm:$0xff] %vm2196_vm3, %v2443_v48  ;;  %v2459_v36 = vmin.f32 %v2427_v41, 6.0 }
 0x14f   : > { %v2187_v35 = vpack.c.bf16 %v2171_v3, %v2170_v7 }
 0x150   : > { %2491 = vst.msk [vmem:[%s4127_s30 + $0x88] sm:$0xff] %vm2196_vm3, %v2459_v36 }
 0x151   : > { %2785 = vmatmul.mubr.msk.bf16.gmra.mrb[12].mxu1 %vm2196_vm3, %v2187_v35 }
 0x177   : > { %v2762_v11 = vpop.f32.mrb[4].mxu0 }
 0x178   : > { %v2308_v55 = vadd.f32 %v2762_v11, %v4111_v44  ;;  %v2299_v42 = vpop.f32.mrb[5].mxu0 }
 0x179   : > { %v2300_v12 = vadd.f32 %v4111_v44, %v2299_v42  ;;  %v2763_v5 = vpop.f32.mrb[6].mxu0 }
 0x17a   : > { %v2416_v29 = vmax.f32 %v2308_v55, 0.0  ;;  %v2311_v15 = vadd.f32 %v2763_v5, %v4111_v44  ;;  %v2302_v16 = vpop.f32.mrb[7].mxu0 }
 0x17b   : > { %v2414_v46 = vmax.f32 %v2300_v12, 0.0  ;;  %v2303_v17 = vadd.f32 %v4111_v44, %v2302_v16 }
 0x17c   : > { %v2448_v2 = vmin.f32 %v2416_v29, 6.0  ;;  %v2417_v21 = vmax.f32 %v2311_v15, 0.0 }
 0x17d   : > { %v2446_v20 = vmin.f32 %v2414_v46, 6.0  ;;  %v2415_v51 = vmax.f32 %v2303_v17, 0.0 }
 0x17e   : > { %2480 = vst.msk [vmem:[%s4127_s30 + $0x30] sm:$0xff] %vm2196_vm3, %v2448_v2  ;;  %v2449_v63 = vmin.f32 %v2417_v21, 6.0 }
 0x17f   : > { %2478 = vst.msk [vmem:[%s4127_s30 + $0x20] sm:$0xff] %vm2196_vm3, %v2446_v20  ;;  %v2447_v9 = vmin.f32 %v2415_v51, 6.0 }
 0x180   : > { %2481 = vst.msk [vmem:[%s4127_s30 + $0x38] sm:$0xff] %vm2196_vm3, %v2449_v63 }
 0x181   : > { %2479 = vst.msk [vmem:[%s4127_s30 + $0x28] sm:$0xff] %vm2196_vm3, %v2447_v9 }
 0x18a   : > { %v2778_v26 = vpop.f32.mrb[4].mxu1 }
 0x18b   : > { %v2372_v27 = vadd.f32 %v2778_v26, %v4111_v44  ;;  %v2363_v30 = vpop.f32.mrb[5].mxu1 }
 0x18c   : > { %v2364_v13 = vadd.f32 %v4111_v44, %v2363_v30  ;;  %v2779_v62 = vpop.f32.mrb[6].mxu1 }
 0x18d   : > { %v2432_v10 = vmax.f32 %v2372_v27, 0.0  ;;  %v2375_v59 = vadd.f32 %v2779_v62, %v4111_v44  ;;  %v2366_v25 = vpop.f32.mrb[7].mxu1 }
 0x18e   : > { %v2430_v43 = vmax.f32 %v2364_v13, 0.0  ;;  %v2367_v28 = vadd.f32 %v4111_v44, %v2366_v25 }
 0x18f   : > { %v2464_v31 = vmin.f32 %v2432_v10, 6.0  ;;  %v2433_v32 = vmax.f32 %v2375_v59, 0.0 }
 0x190   : > { %v2462_v1 = vmin.f32 %v2430_v43, 6.0  ;;  %v2431_v33 = vmax.f32 %v2367_v28, 0.0 }
 0x191   : > { %2496 = vst.msk [vmem:[%s4127_s30 + $0xb0] sm:$0xff] %vm2196_vm3, %v2464_v31  ;;  %v2465_v24 = vmin.f32 %v2433_v32, 6.0 }
 0x192   : > { %2494 = vst.msk [vmem:[%s4127_s30 + $0xa0] sm:$0xff] %vm2196_vm3, %v2462_v1  ;;  %v2463_v4 = vmin.f32 %v2431_v33, 6.0 }
 0x193   : > { %2497 = vst.msk [vmem:[%s4127_s30 + $0xb8] sm:$0xff] %vm2196_vm3, %v2465_v24 }
 0x194   : > { %2495 = vst.msk [vmem:[%s4127_s30 + $0xa8] sm:$0xff] %vm2196_vm3, %v2463_v4 }
 0x1c4   : > { %v2766_v37 = vpop.f32.mrb[8].mxu0 }
 0x1c5   : > { %v2324_v23 = vadd.f32 %v2766_v37, %v4111_v44  ;;  %v2315_v40 = vpop.f32.mrb[9].mxu0 }
 0x1c6   : > { %v2316_v34 = vadd.f32 %v4111_v44, %v2315_v40  ;;  %v2767_v49 = vpop.f32.mrb[10].mxu0 }
 0x1c7   : > { %v2420_v18 = vmax.f32 %v2324_v23, 0.0  ;;  %v2327_v61 = vadd.f32 %v2767_v49, %v4111_v44  ;;  %v2318_v50 = vpop.f32.mrb[11].mxu0 }
 0x1c8   : > { %v2418_v19 = vmax.f32 %v2316_v34, 0.0  ;;  %v2319_v52 = vadd.f32 %v4111_v44, %v2318_v50 }
 0x1c9   : > { %v2452_v53 = vmin.f32 %v2420_v18, 6.0  ;;  %v2421_v57 = vmax.f32 %v2327_v61, 0.0 }
 0x1ca   : > { %v2450_v22 = vmin.f32 %v2418_v19, 6.0  ;;  %v2419_v39 = vmax.f32 %v2319_v52, 0.0 }
 0x1cb   : > { %2484 = vst.msk [vmem:[%s4127_s30 + $0x50] sm:$0xff] %vm2196_vm3, %v2452_v53  ;;  %v2453_v58 = vmin.f32 %v2421_v57, 6.0 }
 0x1cc   : > { %2482 = vst.msk [vmem:[%s4127_s30 + $0x40] sm:$0xff] %vm2196_vm3, %v2450_v22  ;;  %v2451_v60 = vmin.f32 %v2419_v39, 6.0 }
 0x1cd   : > { %2485 = vst.msk [vmem:[%s4127_s30 + $0x58] sm:$0xff] %vm2196_vm3, %v2453_v58 }
 0x1ce   : > { %2483 = vst.msk [vmem:[%s4127_s30 + $0x48] sm:$0xff] %vm2196_vm3, %v2451_v60 }
 0x1d7   : > { %v2782_v45 = vpop.f32.mrb[8].mxu1 }
 0x1d8   : > { %v2388_v47 = vadd.f32 %v2782_v45, %v4111_v44  ;;  %v2379_v14 = vpop.f32.mrb[9].mxu1 }
 0x1d9   : > { %v2380_v0 = vadd.f32 %v4111_v44, %v2379_v14  ;;  %v2783_v54 = vpop.f32.mrb[10].mxu1 }
 0x1da   : > { %v2436_v6 = vmax.f32 %v2388_v47, 0.0  ;;  %v2391_v56 = vadd.f32 %v2783_v54, %v4111_v44  ;;  %v2382_v8 = vpop.f32.mrb[11].mxu1 }
 0x1db   : > { %v2434_v38 = vmax.f32 %v2380_v0, 0.0  ;;  %v2383_v7 = vadd.f32 %v4111_v44, %v2382_v8 }
 0x1dc   : > { %v2468_v48 = vmin.f32 %v2436_v6, 6.0  ;;  %v2437_v41 = vmax.f32 %v2391_v56, 0.0 }
 0x1dd   : > { %v2466_v3 = vmin.f32 %v2434_v38, 6.0  ;;  %v2435_v36 = vmax.f32 %v2383_v7, 0.0 }
 0x1de   : > { %2500 = vst.msk [vmem:[%s4127_s30 + $0xd0] sm:$0xff] %vm2196_vm3, %v2468_v48  ;;  %v2469_v35 = vmin.f32 %v2437_v41, 6.0 }
 0x1df   : > { %2498 = vst.msk [vmem:[%s4127_s30 + $0xc0] sm:$0xff] %vm2196_vm3, %v2466_v3  ;;  %v2467_v11 = vmin.f32 %v2435_v36, 6.0 }
 0x1e0   : > { %2501 = vst.msk [vmem:[%s4127_s30 + $0xd8] sm:$0xff] %vm2196_vm3, %v2469_v35 }
 0x1e1   : > { %2499 = vst.msk [vmem:[%s4127_s30 + $0xc8] sm:$0xff] %vm2196_vm3, %v2467_v11 }
 0x211   : > { %v2770_v55 = vpop.f32.mrb[12].mxu0 }
 0x212   : > { %v2340_v42 = vadd.f32 %v2770_v55, %v4111_v44  ;;  %v2331_v12 = vpop.f32.mrb[13].mxu0 }
 0x213   : > { %v2332_v5 = vadd.f32 %v4111_v44, %v2331_v12  ;;  %v2771_v29 = vpop.f32.mrb[14].mxu0 }
 0x214   : > { %v2424_v15 = vmax.f32 %v2340_v42, 0.0  ;;  %v2343_v16 = vadd.f32 %v2771_v29, %v4111_v44  ;;  %v2334_v46 = vpop.f32.mrb[15].mxu0 }
 0x215   : > { %v2422_v17 = vmax.f32 %v2332_v5, 0.0  ;;  %v2335_v2 = vadd.f32 %v4111_v44, %v2334_v46 }
 0x216   : > { %v2456_v21 = vmin.f32 %v2424_v15, 6.0  ;;  %v2425_v20 = vmax.f32 %v2343_v16, 0.0 }
 0x217   : > { %v2454_v51 = vmin.f32 %v2422_v17, 6.0  ;;  %v2423_v63 = vmax.f32 %v2335_v2, 0.0 }
 0x218   : > { %2488 = vst.msk [vmem:[%s4127_s30 + $0x70] sm:$0xff] %vm2196_vm3, %v2456_v21  ;;  %v2457_v9 = vmin.f32 %v2425_v20, 6.0 }
 0x219   : > { %2486 = vst.msk [vmem:[%s4127_s30 + $0x60] sm:$0xff] %vm2196_vm3, %v2454_v51  ;;  %v2455_v26 = vmin.f32 %v2423_v63, 6.0 }
 0x21a   : > { %2489 = vst.msk [vmem:[%s4127_s30 + $0x78] sm:$0xff] %vm2196_vm3, %v2457_v9 }
 0x21b   : > { %2487 = vst.msk [vmem:[%s4127_s30 + $0x68] sm:$0xff] %vm2196_vm3, %v2455_v26 }
 0x224   : > { %v2786_v27 = vpop.f32.mrb[12].mxu1 }
 0x225   : > { %v2404_v30 = vadd.f32 %v2786_v27, %v4111_v44  ;;  %v2395_v13 = vpop.f32.mrb[13].mxu1 }
 0x226   : > { %v2396_v62 = vadd.f32 %v4111_v44, %v2395_v13  ;;  %v2787_v10 = vpop.f32.mrb[14].mxu1 }
 0x227   : > { %v2440_v59 = vmax.f32 %v2404_v30, 0.0  ;;  %v2407_v25 = vadd.f32 %v2787_v10, %v4111_v44  ;;  %v2398_v43 = vpop.f32.mrb[15].mxu1 }
 0x228   : > { %v2438_v28 = vmax.f32 %v2396_v62, 0.0  ;;  %v2399_v31 = vadd.f32 %v4111_v44, %v2398_v43 }
 0x229   : > { %v2472_v32 = vmin.f32 %v2440_v59, 6.0  ;;  %v2441_v1 = vmax.f32 %v2407_v25, 0.0 }
 0x22a   : > { %v2470_v33 = vmin.f32 %v2438_v28, 6.0  ;;  %v2439_v24 = vmax.f32 %v2399_v31, 0.0 }
 0x22b   : > { %2504 = vst.msk [vmem:[%s4127_s30 + $0xf0] sm:$0xff] %vm2196_vm3, %v2472_v32  ;;  %v2473_v4 = vmin.f32 %v2441_v1, 6.0 }
 0x22c   : > { %2502 = vst.msk [vmem:[%s4127_s30 + $0xe0] sm:$0xff] %vm2196_vm3, %v2470_v33  ;;  %v2471_v37 = vmin.f32 %v2439_v24, 6.0 }
 0x22d   : > { %2505 = vst.msk [vmem:[%s4127_s30 + $0xf8] sm:$0xff] %vm2196_vm3, %v2473_v4 }
 0x22e   : > { %2503 = vst.msk [vmem:[%s4127_s30 + $0xe8] sm:$0xff] %vm2196_vm3, %v2471_v37 }
 0x22f PF: > { %s15_s20 = sadd.s32 1, %s2859_s20   ;;  %s4244_s18 = smov %s2855_s19 }
 0x230   : > { %p12_p5 = scmp.ge.s32.totalorder %s15_s20, 4   ;;  %s4245_s19 = smov %s4247_s21 }
 0x232   :  { %14 = sbr.rel (!%p12_p5) target bundleno = 2 (0x2), region = 73 }

</bundles_post_ra>
